<compile_context>
chip_gen: v7x
topology: tpu7x:2x2x1
jax: 0.10.0
libtpu: 0.0.40
codegen_flags: <defaults>
</compile_context>

<pallas_src>
import functools

import jax
import jax.numpy as jnp
from jax import lax
from jax.experimental import pallas as pl
from jax.experimental.pallas import tpu as pltpu


# ----------------------------------------------------------------------------
# Fused multi-head attention kernel: one grid step = one batch element.
# ----------------------------------------------------------------------------
def _mha_kernel(xq_ref, xk_ref, xv_ref,
                wq_ref, bq_ref, wk_ref, bk_ref, wv_ref, bv_ref,
                wo_ref, bo_ref, hmask_ref,
                out_ref, *, head_num):
    f32 = jnp.float32
    bf16 = jnp.bfloat16

    xq = xq_ref[0].astype(bf16)          # (Sq, Cq_in)
    xk = xk_ref[0].astype(bf16)          # (Sk, Ck)
    xv = xv_ref[0].astype(bf16)          # (Sk, Ck)

    # Full-width projections: one MXU matmul each, lane dim = Cq (not head_dim).
    # 1/temperature was pre-folded into wq/bq in the wrapper.
    qf = (jnp.dot(xq, wq_ref[...], preferred_element_type=f32)
          + bq_ref[...]).astype(bf16)                                   # (Sq, Cq)
    kf = (jnp.dot(xk, wk_ref[...], preferred_element_type=f32)
          + bk_ref[...]).astype(bf16)                                   # (Sk, Cq)
    vf = (jnp.dot(xv, wv_ref[...], preferred_element_type=f32)
          + bv_ref[...]).astype(bf16)                                   # (Sk, Cq)

    sq, cq = qf.shape
    ctx = jnp.zeros((sq, cq), f32)

    # Per-head attention with NO lane slicing: mask k/v to head h's channel block.
    # Static Python loop (head_num is small); fully unrolled for the scheduler.
    for h in range(head_num):
        mh = hmask_ref[h]                 # (1, Cq) bf16, 1.0 on head h's channels

        # logits_h = q_h @ k_h^T, computed as a contraction over all Cq channels
        # with the non-head channels of k zeroed (exact; no transpose materialized).
        logits = lax.dot_general(qf, kf * mh, (((1,), (1,)), ((), ())),
                                 preferred_element_type=f32)            # (Sq, Sk)

        # Softmax in f32; divide goes to the EUP via approximate reciprocal.
        m = jnp.max(logits, axis=-1, keepdims=True)
        p = jnp.exp(logits - m)
        attn = p * pl.reciprocal(jnp.sum(p, axis=-1, keepdims=True), approx=True)

        # attn_h @ (v * mask_h) writes head h's context into its own channel
        # block (zeros elsewhere); summing over heads == concat over heads.
        ctx = ctx + jnp.dot(attn.astype(bf16), vf * mh,
                            preferred_element_type=f32)                 # (Sq, Cq)

    # Single fused output projection in f32 accumulation.
    out = jnp.dot(ctx.astype(bf16), wo_ref[...],
                  preferred_element_type=f32) + bo_ref[...]             # (Sq, Cq)
    out_ref[0] = out.astype(out_ref.dtype)
    # TODO(synk): optional attention mask (masked_fill with -inf) and the `prev`
    # logits residual are not implemented; the reference forward is exercised
    # with mask=None / prev=None.  Dropout is identity (eval semantics).


# ----------------------------------------------------------------------------
# Parameters (PyTorch layout: Linear weight is (out_features, in_features)).
# ----------------------------------------------------------------------------
def init_params(key, q_channels, k_channels):
    ks = jax.random.split(key, 8)
    s = 0.05
    f32 = jnp.float32
    return dict(
        q_w=jax.random.normal(ks[0], (q_channels, q_channels), f32) * s,
        q_b=jax.random.normal(ks[1], (q_channels,), f32) * s,
        k_w=jax.random.normal(ks[2], (q_channels, k_channels), f32) * s,
        k_b=jax.random.normal(ks[3], (q_channels,), f32) * s,
        v_w=jax.random.normal(ks[4], (q_channels, k_channels), f32) * s,
        v_b=jax.random.normal(ks[5], (q_channels,), f32) * s,
        o_w=jax.random.normal(ks[6], (q_channels, q_channels), f32) * s,
        o_b=jax.random.normal(ks[7], (q_channels,), f32) * s,
    )


def prepare_params(params, head_num, temperature):
    """One-time weight prep (hoisted out of the forward):
    transpose (out,in) -> (in,out), cast MXU operands to bf16, fold 1/temperature
    into the q projection, and build per-head channel masks."""
    cq = params['q_w'].shape[0]
    hd = cq // head_num
    inv_t = 1.0 / float(temperature)
    bf16 = jnp.bfloat16
    f32 = jnp.float32

    wq = (params['q_w'].T * inv_t).astype(bf16)          # (Cq_in, Cq)
    bq = (params['q_b'] * inv_t).reshape(1, cq).astype(f32)
    wk = params['k_w'].T.astype(bf16)                    # (Ck, Cq)
    bk = params['k_b'].reshape(1, cq).astype(f32)
    wv = params['v_w'].T.astype(bf16)                    # (Ck, Cq)
    bv = params['v_b'].reshape(1, cq).astype(f32)
    wo = params['o_w'].T.astype(bf16)                    # (Cq, Cq)
    bo = params['o_b'].reshape(1, cq).astype(f32)

    # Channel c belongs to head c // hd (matches .view(b, len, nh, hd)).
    ch_head = jnp.arange(cq) // hd
    hmask = (ch_head[None, None, :] ==
             jnp.arange(head_num)[:, None, None]).astype(bf16)   # (nh, 1, Cq)

    return dict(wq=wq, bq=bq, wk=wk, bk=bk, wv=wv, bv=bv,
                wo=wo, bo=bo, hmask=hmask)


# ----------------------------------------------------------------------------
# Wrapper: fused forward, grid over batch.
# ----------------------------------------------------------------------------
def multi_head_attention(q, k, v, prepped, *, head_num):
    # q: (B, Sq, Cq); k, v: (B, Sk, Ck)  ->  (B, Sq, Cq)
    B, Sq, Cq_in = q.shape
    _, Sk, Ck = k.shape
    Cq = prepped['wq'].shape[1]

    kern = functools.partial(_mha_kernel, head_num=head_num)
    full2 = lambda b: (0, 0)
    full3 = lambda b: (0, 0, 0)

    return pl.pallas_call(
        kern,
        out_shape=jax.ShapeDtypeStruct((B, Sq, Cq), jnp.float32),
        grid=(B,),
        in_specs=[
            pl.BlockSpec((1, Sq, Cq_in), lambda b: (b, 0, 0)),    # q
            pl.BlockSpec((1, Sk, Ck), lambda b: (b, 0, 0)),       # k
            pl.BlockSpec((1, Sk, Ck), lambda b: (b, 0, 0)),       # v
            pl.BlockSpec((Cq_in, Cq), full2),                     # wq (bf16, pre-scaled)
            pl.BlockSpec((1, Cq), full2),                         # bq (f32, pre-scaled)
            pl.BlockSpec((Ck, Cq), full2),                        # wk
            pl.BlockSpec((1, Cq), full2),                         # bk
            pl.BlockSpec((Ck, Cq), full2),                        # wv
            pl.BlockSpec((1, Cq), full2),                         # bv
            pl.BlockSpec((Cq, Cq), full2),                        # wo
            pl.BlockSpec((1, Cq), full2),                         # bo
            pl.BlockSpec((head_num, 1, Cq), full3),               # per-head channel masks
        ],
        out_specs=pl.BlockSpec((1, Sq, Cq), lambda b: (b, 0, 0)),
        compiler_params=pltpu.CompilerParams(
            dimension_semantics=("parallel",)),                   # split batch across TCs
    )(q, k, v,
      prepped['wq'], prepped['bq'], prepped['wk'], prepped['bk'],
      prepped['wv'], prepped['bv'], prepped['wo'], prepped['bo'],
      prepped['hmask'])


# ----------------------------------------------------------------------------
# Pure-JAX f32 reference (mirrors the PyTorch forward, dropout = identity).
# ----------------------------------------------------------------------------
def _reference_mha(q, k, v, params, head_num, temperature):
    B, Sq, Cq = q.shape
    hd = Cq // head_num

    def lin(x, w, b):
        return x @ w.T + b

    qp = lin(q, params['q_w'], params['q_b']).reshape(B, Sq, head_num, hd).transpose(0, 2, 1, 3)
    kp = lin(k, params['k_w'], params['k_b']).reshape(B, -1, head_num, hd).transpose(0, 2, 1, 3)
    vp = lin(v, params['v_w'], params['v_b']).reshape(B, -1, head_num, hd).transpose(0, 2, 1, 3)
    attn = jnp.einsum('bhqd,bhkd->bhqk', qp, kp) / temperature
    attn = jax.nn.softmax(attn, axis=-1)
    ctx = jnp.einsum('bhqk,bhkd->bhqd', attn, vp)
    ctx = ctx.transpose(0, 2, 1, 3).reshape(B, Sq, head_num * hd)
    return lin(ctx, params['o_w'], params['o_b'])


if __name__ == "__main__":
    # Small shapes consistent with the module (cross-attention-capable):
    # q_channels=32, k_channels=48, head_num=4, q_len=64, kv_len=48, batch=2.
    B = 2
    q_channels = 32
    k_channels = 48
    head_num = 4
    q_len = 64
    kv_len = 48
    temperature = q_channels ** 0.5   # as defined by the module (q_channels ** 0.5)

    key = jax.random.PRNGKey(0)
    kq, kk, kv_, kp = jax.random.split(key, 4)
    q = jax.random.normal(kq, (B, q_len, q_channels), jnp.float32)
    k = jax.random.normal(kk, (B, kv_len, k_channels), jnp.float32)
    v = jax.random.normal(kv_, (B, kv_len, k_channels), jnp.float32)

    params = init_params(kp, q_channels, k_channels)
    prepped = prepare_params(params, head_num, temperature)   # one-time weight prep

    out = multi_head_attention(q, k, v, prepped, head_num=head_num)
    out = jax.block_until_ready(out)

    assert out.shape == (B, q_len, q_channels)
    assert bool(jnp.all(jnp.isfinite(out)))

    # Loose check vs f32 reference (kernel uses bf16 MXU operands + approx recip).
    ref = _reference_mha(q, k, v, params, head_num, temperature)
    max_err = float(jnp.max(jnp.abs(out - ref)))
    assert max_err < 5e-2, f"max abs error vs reference too large: {max_err}"

    print("KERNEL_OK")
</pallas_src>

<mosaic_0001>
module attributes {stable_mosaic.version = 11 : i64} {
  func.func @_mha_kernel(%arg0: i32, %arg1: memref<1x64x32xf32, #tpu.memory_space<vmem>>, %arg2: memref<1x48x48xf32, #tpu.memory_space<vmem>>, %arg3: memref<1x48x48xf32, #tpu.memory_space<vmem>>, %arg4: memref<32x32xbf16, #tpu.memory_space<vmem>>, %arg5: memref<1x32xf32, #tpu.memory_space<vmem>>, %arg6: memref<48x32xbf16, #tpu.memory_space<vmem>>, %arg7: memref<1x32xf32, #tpu.memory_space<vmem>>, %arg8: memref<48x32xbf16, #tpu.memory_space<vmem>>, %arg9: memref<1x32xf32, #tpu.memory_space<vmem>>, %arg10: memref<32x32xbf16, #tpu.memory_space<vmem>>, %arg11: memref<1x32xf32, #tpu.memory_space<vmem>>, %arg12: memref<4x1x32xbf16, #tpu.memory_space<vmem>>, %arg13: memref<1x64x32xf32, #tpu.memory_space<vmem>>) attributes {dimension_semantics = [#tpu.dimension_semantics<parallel>], iteration_bounds = array<i64: 2>, scalar_prefetch = 0 : i64, scratch_operands = 0 : i64, tpu.core_type = #tpu.core_type<tc>, window_params = [{transform_indices = @transform_0, window_bounds = array<i64: 1, 64, 32>}, {transform_indices = @transform_1, window_bounds = array<i64: 1, 48, 48>}, {transform_indices = @transform_2, window_bounds = array<i64: 1, 48, 48>}, {pipeline_mode = #tpu.pipeline_mode<synchronous>, transform_indices = @transform_3, window_bounds = array<i64: 32, 32>}, {pipeline_mode = #tpu.pipeline_mode<synchronous>, transform_indices = @transform_4, window_bounds = array<i64: 1, 32>}, {pipeline_mode = #tpu.pipeline_mode<synchronous>, transform_indices = @transform_5, window_bounds = array<i64: 48, 32>}, {pipeline_mode = #tpu.pipeline_mode<synchronous>, transform_indices = @transform_6, window_bounds = array<i64: 1, 32>}, {pipeline_mode = #tpu.pipeline_mode<synchronous>, transform_indices = @transform_7, window_bounds = array<i64: 48, 32>}, {pipeline_mode = #tpu.pipeline_mode<synchronous>, transform_indices = @transform_8, window_bounds = array<i64: 1, 32>}, {pipeline_mode = #tpu.pipeline_mode<synchronous>, transform_indices = @transform_9, window_bounds = array<i64: 32, 32>}, {pipeline_mode = #tpu.pipeline_mode<synchronous>, transform_indices = @transform_10, window_bounds = array<i64: 1, 32>}, {pipeline_mode = #tpu.pipeline_mode<synchronous>, transform_indices = @transform_11, window_bounds = array<i64: 4, 1, 32>}, {transform_indices = @transform_12, window_bounds = array<i64: 1, 64, 32>}]} {
    %c0 = arith.constant 0 : index
    %c0_0 = arith.constant 0 : index
    %c0_1 = arith.constant 0 : index
    %0 = vector.load %arg1[%c0, %c0_0, %c0_1] : memref<1x64x32xf32, #tpu.memory_space<vmem>>, vector<1x64x32xf32>
    %1 = vector.shape_cast %0 : vector<1x64x32xf32> to vector<64x32xf32>
    %2 = arith.truncf %1 : vector<64x32xf32> to vector<64x32xbf16>
    %c0_2 = arith.constant 0 : index
    %c0_3 = arith.constant 0 : index
    %c0_4 = arith.constant 0 : index
    %3 = vector.load %arg2[%c0_2, %c0_3, %c0_4] : memref<1x48x48xf32, #tpu.memory_space<vmem>>, vector<1x48x48xf32>
    %4 = vector.shape_cast %3 : vector<1x48x48xf32> to vector<48x48xf32>
    %5 = arith.truncf %4 : vector<48x48xf32> to vector<48x48xbf16>
    %c0_5 = arith.constant 0 : index
    %c0_6 = arith.constant 0 : index
    %c0_7 = arith.constant 0 : index
    %6 = vector.load %arg3[%c0_5, %c0_6, %c0_7] : memref<1x48x48xf32, #tpu.memory_space<vmem>>, vector<1x48x48xf32>
    %7 = vector.shape_cast %6 : vector<1x48x48xf32> to vector<48x48xf32>
    %8 = arith.truncf %7 : vector<48x48xf32> to vector<48x48xbf16>
    %c0_8 = arith.constant 0 : index
    %c0_9 = arith.constant 0 : index
    %9 = vector.load %arg4[%c0_8, %c0_9] : memref<32x32xbf16, #tpu.memory_space<vmem>>, vector<32x32xbf16>
    %cst = arith.constant dense<0.000000e+00> : vector<64x32xf32>
    %10 = tpu.matmul %2, %9, %cst {dimension_numbers = #tpu.dot_dimension_numbers<[1], [0], [0], [1], [0, 0, 1, 1], [], []>} : vector<64x32xbf16>, vector<32x32xbf16>, vector<64x32xf32> -> vector<64x32xf32>
    %c0_10 = arith.constant 0 : index
    %c0_11 = arith.constant 0 : index
    %11 = vector.load %arg5[%c0_10, %c0_11] : memref<1x32xf32, #tpu.memory_space<vmem>>, vector<1x32xf32>
    %12 = vector.broadcast %11 : vector<1x32xf32> to vector<64x32xf32>
    %13 = arith.addf %10, %12 : vector<64x32xf32>
    %14 = arith.truncf %13 : vector<64x32xf32> to vector<64x32xbf16>
    %c0_12 = arith.constant 0 : index
    %c0_13 = arith.constant 0 : index
    %15 = vector.load %arg6[%c0_12, %c0_13] : memref<48x32xbf16, #tpu.memory_space<vmem>>, vector<48x32xbf16>
    %cst_14 = arith.constant dense<0.000000e+00> : vector<48x32xf32>
    %16 = tpu.matmul %5, %15, %cst_14 {dimension_numbers = #tpu.dot_dimension_numbers<[1], [0], [0], [1], [0, 0, 1, 1], [], []>} : vector<48x48xbf16>, vector<48x32xbf16>, vector<48x32xf32> -> vector<48x32xf32>
    %c0_15 = arith.constant 0 : index
    %c0_16 = arith.constant 0 : index
    %17 = vector.load %arg7[%c0_15, %c0_16] : memref<1x32xf32, #tpu.memory_space<vmem>>, vector<1x32xf32>
    %18 = vector.broadcast %17 : vector<1x32xf32> to vector<48x32xf32>
    %19 = arith.addf %16, %18 : vector<48x32xf32>
    %20 = arith.truncf %19 : vector<48x32xf32> to vector<48x32xbf16>
    %c0_17 = arith.constant 0 : index
    %c0_18 = arith.constant 0 : index
    %21 = vector.load %arg8[%c0_17, %c0_18] : memref<48x32xbf16, #tpu.memory_space<vmem>>, vector<48x32xbf16>
    %cst_19 = arith.constant dense<0.000000e+00> : vector<48x32xf32>
    %22 = tpu.matmul %8, %21, %cst_19 {dimension_numbers = #tpu.dot_dimension_numbers<[1], [0], [0], [1], [0, 0, 1, 1], [], []>} : vector<48x48xbf16>, vector<48x32xbf16>, vector<48x32xf32> -> vector<48x32xf32>
    %c0_20 = arith.constant 0 : index
    %c0_21 = arith.constant 0 : index
    %23 = vector.load %arg9[%c0_20, %c0_21] : memref<1x32xf32, #tpu.memory_space<vmem>>, vector<1x32xf32>
    %24 = vector.broadcast %23 : vector<1x32xf32> to vector<48x32xf32>
    %25 = arith.addf %22, %24 : vector<48x32xf32>
    %26 = arith.truncf %25 : vector<48x32xf32> to vector<48x32xbf16>
    %cst_22 = arith.constant 0.000000e+00 : f32
    %27 = vector.broadcast %cst_22 : f32 to vector<64x32xf32>
    %c0_23 = arith.constant 0 : index
    %c0_24 = arith.constant 0 : index
    %c0_25 = arith.constant 0 : index
    %28 = vector.load %arg12[%c0_23, %c0_24, %c0_25] : memref<4x1x32xbf16, #tpu.memory_space<vmem>>, vector<1x1x32xbf16>
    %29 = vector.shape_cast %28 : vector<1x1x32xbf16> to vector<1x32xbf16>
    %30 = vector.broadcast %29 : vector<1x32xbf16> to vector<48x32xbf16>
    %31 = arith.mulf %20, %30 : vector<48x32xbf16>
    %cst_26 = arith.constant dense<0.000000e+00> : vector<64x48xf32>
    %32 = tpu.matmul %14, %31, %cst_26 {dimension_numbers = #tpu.dot_dimension_numbers<[1], [1], [0], [0], [0, 0, 1, 0], [], []>} : vector<64x32xbf16>, vector<48x32xbf16>, vector<64x48xf32> -> vector<64x48xf32>
    %cst_27 = arith.constant dense<0xFF800000> : vector<64xf32>
    %33 = vector.multi_reduction <maximumf>, %32, %cst_27 [1] : vector<64x48xf32> to vector<64xf32>
    %34 = vector.shape_cast %33 : vector<64xf32> to vector<64x1xf32>
    %35 = vector.broadcast %34 : vector<64x1xf32> to vector<64x48xf32>
    %36 = arith.subf %32, %35 : vector<64x48xf32>
    %37 = math.exp %36 : vector<64x48xf32>
    %cst_28 = arith.constant dense<0.000000e+00> : vector<64xf32>
    %38 = vector.multi_reduction <add>, %37, %cst_28 [1] : vector<64x48xf32> to vector<64xf32>
    %39 = vector.shape_cast %38 : vector<64xf32> to vector<64x1xf32>
    %40 = tpu.reciprocal %39 {approx = true} : vector<64x1xf32> -> vector<64x1xf32>
    %41 = vector.broadcast %40 : vector<64x1xf32> to vector<64x48xf32>
    %42 = arith.mulf %37, %41 : vector<64x48xf32>
    %43 = arith.truncf %42 : vector<64x48xf32> to vector<64x48xbf16>
    %44 = vector.broadcast %29 : vector<1x32xbf16> to vector<48x32xbf16>
    %45 = arith.mulf %26, %44 : vector<48x32xbf16>
    %cst_29 = arith.constant dense<0.000000e+00> : vector<64x32xf32>
    %46 = tpu.matmul %43, %45, %cst_29 {dimension_numbers = #tpu.dot_dimension_numbers<[1], [0], [0], [1], [0, 0, 1, 1], [], []>} : vector<64x48xbf16>, vector<48x32xbf16>, vector<64x32xf32> -> vector<64x32xf32>
    %47 = arith.addf %27, %46 : vector<64x32xf32>
    %c1 = arith.constant 1 : index
    %c0_30 = arith.constant 0 : index
    %c0_31 = arith.constant 0 : index
    %48 = vector.load %arg12[%c1, %c0_30, %c0_31] : memref<4x1x32xbf16, #tpu.memory_space<vmem>>, vector<1x1x32xbf16>
    %49 = vector.shape_cast %48 : vector<1x1x32xbf16> to vector<1x32xbf16>
    %50 = vector.broadcast %49 : vector<1x32xbf16> to vector<48x32xbf16>
    %51 = arith.mulf %20, %50 : vector<48x32xbf16>
    %cst_32 = arith.constant dense<0.000000e+00> : vector<64x48xf32>
    %52 = tpu.matmul %14, %51, %cst_32 {dimension_numbers = #tpu.dot_dimension_numbers<[1], [1], [0], [0], [0, 0, 1, 0], [], []>} : vector<64x32xbf16>, vector<48x32xbf16>, vector<64x48xf32> -> vector<64x48xf32>
    %cst_33 = arith.constant dense<0xFF800000> : vector<64xf32>
    %53 = vector.multi_reduction <maximumf>, %52, %cst_33 [1] : vector<64x48xf32> to vector<64xf32>
    %54 = vector.shape_cast %53 : vector<64xf32> to vector<64x1xf32>
    %55 = vector.broadcast %54 : vector<64x1xf32> to vector<64x48xf32>
    %56 = arith.subf %52, %55 : vector<64x48xf32>
    %57 = math.exp %56 : vector<64x48xf32>
    %cst_34 = arith.constant dense<0.000000e+00> : vector<64xf32>
    %58 = vector.multi_reduction <add>, %57, %cst_34 [1] : vector<64x48xf32> to vector<64xf32>
    %59 = vector.shape_cast %58 : vector<64xf32> to vector<64x1xf32>
    %60 = tpu.reciprocal %59 {approx = true} : vector<64x1xf32> -> vector<64x1xf32>
    %61 = vector.broadcast %60 : vector<64x1xf32> to vector<64x48xf32>
    %62 = arith.mulf %57, %61 : vector<64x48xf32>
    %63 = arith.truncf %62 : vector<64x48xf32> to vector<64x48xbf16>
    %64 = vector.broadcast %49 : vector<1x32xbf16> to vector<48x32xbf16>
    %65 = arith.mulf %26, %64 : vector<48x32xbf16>
    %cst_35 = arith.constant dense<0.000000e+00> : vector<64x32xf32>
    %66 = tpu.matmul %63, %65, %cst_35 {dimension_numbers = #tpu.dot_dimension_numbers<[1], [0], [0], [1], [0, 0, 1, 1], [], []>} : vector<64x48xbf16>, vector<48x32xbf16>, vector<64x32xf32> -> vector<64x32xf32>
    %67 = arith.addf %47, %66 : vector<64x32xf32>
    %c2 = arith.constant 2 : index
    %c0_36 = arith.constant 0 : index
    %c0_37 = arith.constant 0 : index
    %68 = vector.load %arg12[%c2, %c0_36, %c0_37] : memref<4x1x32xbf16, #tpu.memory_space<vmem>>, vector<1x1x32xbf16>
    %69 = vector.shape_cast %68 : vector<1x1x32xbf16> to vector<1x32xbf16>
    %70 = vector.broadcast %69 : vector<1x32xbf16> to vector<48x32xbf16>
    %71 = arith.mulf %20, %70 : vector<48x32xbf16>
    %cst_38 = arith.constant dense<0.000000e+00> : vector<64x48xf32>
    %72 = tpu.matmul %14, %71, %cst_38 {dimension_numbers = #tpu.dot_dimension_numbers<[1], [1], [0], [0], [0, 0, 1, 0], [], []>} : vector<64x32xbf16>, vector<48x32xbf16>, vector<64x48xf32> -> vector<64x48xf32>
    %cst_39 = arith.constant dense<0xFF800000> : vector<64xf32>
    %73 = vector.multi_reduction <maximumf>, %72, %cst_39 [1] : vector<64x48xf32> to vector<64xf32>
    %74 = vector.shape_cast %73 : vector<64xf32> to vector<64x1xf32>
    %75 = vector.broadcast %74 : vector<64x1xf32> to vector<64x48xf32>
    %76 = arith.subf %72, %75 : vector<64x48xf32>
    %77 = math.exp %76 : vector<64x48xf32>
    %cst_40 = arith.constant dense<0.000000e+00> : vector<64xf32>
    %78 = vector.multi_reduction <add>, %77, %cst_40 [1] : vector<64x48xf32> to vector<64xf32>
    %79 = vector.shape_cast %78 : vector<64xf32> to vector<64x1xf32>
    %80 = tpu.reciprocal %79 {approx = true} : vector<64x1xf32> -> vector<64x1xf32>
    %81 = vector.broadcast %80 : vector<64x1xf32> to vector<64x48xf32>
    %82 = arith.mulf %77, %81 : vector<64x48xf32>
    %83 = arith.truncf %82 : vector<64x48xf32> to vector<64x48xbf16>
    %84 = vector.broadcast %69 : vector<1x32xbf16> to vector<48x32xbf16>
    %85 = arith.mulf %26, %84 : vector<48x32xbf16>
    %cst_41 = arith.constant dense<0.000000e+00> : vector<64x32xf32>
    %86 = tpu.matmul %83, %85, %cst_41 {dimension_numbers = #tpu.dot_dimension_numbers<[1], [0], [0], [1], [0, 0, 1, 1], [], []>} : vector<64x48xbf16>, vector<48x32xbf16>, vector<64x32xf32> -> vector<64x32xf32>
    %87 = arith.addf %67, %86 : vector<64x32xf32>
    %c3 = arith.constant 3 : index
    %c0_42 = arith.constant 0 : index
    %c0_43 = arith.constant 0 : index
    %88 = vector.load %arg12[%c3, %c0_42, %c0_43] : memref<4x1x32xbf16, #tpu.memory_space<vmem>>, vector<1x1x32xbf16>
    %89 = vector.shape_cast %88 : vector<1x1x32xbf16> to vector<1x32xbf16>
    %90 = vector.broadcast %89 : vector<1x32xbf16> to vector<48x32xbf16>
    %91 = arith.mulf %20, %90 : vector<48x32xbf16>
    %cst_44 = arith.constant dense<0.000000e+00> : vector<64x48xf32>
    %92 = tpu.matmul %14, %91, %cst_44 {dimension_numbers = #tpu.dot_dimension_numbers<[1], [1], [0], [0], [0, 0, 1, 0], [], []>} : vector<64x32xbf16>, vector<48x32xbf16>, vector<64x48xf32> -> vector<64x48xf32>
    %cst_45 = arith.constant dense<0xFF800000> : vector<64xf32>
    %93 = vector.multi_reduction <maximumf>, %92, %cst_45 [1] : vector<64x48xf32> to vector<64xf32>
    %94 = vector.shape_cast %93 : vector<64xf32> to vector<64x1xf32>
    %95 = vector.broadcast %94 : vector<64x1xf32> to vector<64x48xf32>
    %96 = arith.subf %92, %95 : vector<64x48xf32>
    %97 = math.exp %96 : vector<64x48xf32>
    %cst_46 = arith.constant dense<0.000000e+00> : vector<64xf32>
    %98 = vector.multi_reduction <add>, %97, %cst_46 [1] : vector<64x48xf32> to vector<64xf32>
    %99 = vector.shape_cast %98 : vector<64xf32> to vector<64x1xf32>
    %100 = tpu.reciprocal %99 {approx = true} : vector<64x1xf32> -> vector<64x1xf32>
    %101 = vector.broadcast %100 : vector<64x1xf32> to vector<64x48xf32>
    %102 = arith.mulf %97, %101 : vector<64x48xf32>
    %103 = arith.truncf %102 : vector<64x48xf32> to vector<64x48xbf16>
    %104 = vector.broadcast %89 : vector<1x32xbf16> to vector<48x32xbf16>
    %105 = arith.mulf %26, %104 : vector<48x32xbf16>
    %cst_47 = arith.constant dense<0.000000e+00> : vector<64x32xf32>
    %106 = tpu.matmul %103, %105, %cst_47 {dimension_numbers = #tpu.dot_dimension_numbers<[1], [0], [0], [1], [0, 0, 1, 1], [], []>} : vector<64x48xbf16>, vector<48x32xbf16>, vector<64x32xf32> -> vector<64x32xf32>
    %107 = arith.addf %87, %106 : vector<64x32xf32>
    %108 = arith.truncf %107 : vector<64x32xf32> to vector<64x32xbf16>
    %c0_48 = arith.constant 0 : index
    %c0_49 = arith.constant 0 : index
    %109 = vector.load %arg10[%c0_48, %c0_49] : memref<32x32xbf16, #tpu.memory_space<vmem>>, vector<32x32xbf16>
    %cst_50 = arith.constant dense<0.000000e+00> : vector<64x32xf32>
    %110 = tpu.matmul %108, %109, %cst_50 {dimension_numbers = #tpu.dot_dimension_numbers<[1], [0], [0], [1], [0, 0, 1, 1], [], []>} : vector<64x32xbf16>, vector<32x32xbf16>, vector<64x32xf32> -> vector<64x32xf32>
    %c0_51 = arith.constant 0 : index
    %c0_52 = arith.constant 0 : index
    %111 = vector.load %arg11[%c0_51, %c0_52] : memref<1x32xf32, #tpu.memory_space<vmem>>, vector<1x32xf32>
    %112 = vector.broadcast %111 : vector<1x32xf32> to vector<64x32xf32>
    %113 = arith.addf %110, %112 : vector<64x32xf32>
    %c0_53 = arith.constant 0 : index
    %c0_54 = arith.constant 0 : index
    %c0_55 = arith.constant 0 : index
    %114 = vector.load %arg13[%c0_53, %c0_54, %c0_55] : memref<1x64x32xf32, #tpu.memory_space<vmem>>, vector<1x64x32xf32>
    %115 = vector.shape_cast %114 : vector<1x64x32xf32> to vector<64x32xf32>
    %116 = vector.shape_cast %113 : vector<64x32xf32> to vector<1x64x32xf32>
    tpu.vector_store %arg13[%c0_53, %c0_54, %c0_55], %116 {strides = array<i32>} : memref<1x64x32xf32, #tpu.memory_space<vmem>>, vector<1x64x32xf32>,
    return
  }
  func.func @transform_0(%arg0: i32) -> (i32, i32, i32) {
    %c0_i32 = arith.constant 0 : i32
    %c0_i32_0 = arith.constant 0 : i32
    %c0_i32_1 = arith.constant 0 : i32
    return %arg0, %c0_i32, %c0_i32_0 : i32, i32, i32
  }
  func.func @transform_1(%arg0: i32) -> (i32, i32, i32) {
    %c0_i32 = arith.constant 0 : i32
    %c0_i32_0 = arith.constant 0 : i32
    %c0_i32_1 = arith.constant 0 : i32
    return %arg0, %c0_i32, %c0_i32_0 : i32, i32, i32
  }
  func.func @transform_2(%arg0: i32) -> (i32, i32, i32) {
    %c0_i32 = arith.constant 0 : i32
    %c0_i32_0 = arith.constant 0 : i32
    %c0_i32_1 = arith.constant 0 : i32
    return %arg0, %c0_i32, %c0_i32_0 : i32, i32, i32
  }
  func.func @transform_3(%arg0: i32) -> (i32, i32) {
    %c0_i32 = arith.constant 0 : i32
    %c0_i32_0 = arith.constant 0 : i32
    %c0_i32_1 = arith.constant 0 : i32
    return %c0_i32, %c0_i32_0 : i32, i32
  }
  func.func @transform_4(%arg0: i32) -> (i32, i32) {
    %c0_i32 = arith.constant 0 : i32
    %c0_i32_0 = arith.constant 0 : i32
    %c0_i32_1 = arith.constant 0 : i32
    return %c0_i32, %c0_i32_0 : i32, i32
  }
  func.func @transform_5(%arg0: i32) -> (i32, i32) {
    %c0_i32 = arith.constant 0 : i32
    %c0_i32_0 = arith.constant 0 : i32
    %c0_i32_1 = arith.constant 0 : i32
    return %c0_i32, %c0_i32_0 : i32, i32
  }
  func.func @transform_6(%arg0: i32) -> (i32, i32) {
    %c0_i32 = arith.constant 0 : i32
    %c0_i32_0 = arith.constant 0 : i32
    %c0_i32_1 = arith.constant 0 : i32
    return %c0_i32, %c0_i32_0 : i32, i32
  }
  func.func @transform_7(%arg0: i32) -> (i32, i32) {
    %c0_i32 = arith.constant 0 : i32
    %c0_i32_0 = arith.constant 0 : i32
    %c0_i32_1 = arith.constant 0 : i32
    return %c0_i32, %c0_i32_0 : i32, i32
  }
  func.func @transform_8(%arg0: i32) -> (i32, i32) {
    %c0_i32 = arith.constant 0 : i32
    %c0_i32_0 = arith.constant 0 : i32
    %c0_i32_1 = arith.constant 0 : i32
    return %c0_i32, %c0_i32_0 : i32, i32
  }
  func.func @transform_9(%arg0: i32) -> (i32, i32) {
    %c0_i32 = arith.constant 0 : i32
    %c0_i32_0 = arith.constant 0 : i32
    %c0_i32_1 = arith.constant 0 : i32
    return %c0_i32, %c0_i32_0 : i32, i32
  }
  func.func @transform_10(%arg0: i32) -> (i32, i32) {
    %c0_i32 = arith.constant 0 : i32
    %c0_i32_0 = arith.constant 0 : i32
    %c0_i32_1 = arith.constant 0 : i32
    return %c0_i32, %c0_i32_0 : i32, i32
  }
  func.func @transform_11(%arg0: i32) -> (i32, i32, i32) {
    %c0_i32 = arith.constant 0 : i32
    %c0_i32_0 = arith.constant 0 : i32
    %c0_i32_1 = arith.constant 0 : i32
    %c0_i32_2 = arith.constant 0 : i32
    return %c0_i32, %c0_i32_0, %c0_i32_1 : i32, i32, i32
  }
  func.func @transform_12(%arg0: i32) -> (i32, i32, i32) {
    %c0_i32 = arith.constant 0 : i32
    %c0_i32_0 = arith.constant 0 : i32
    %c0_i32_1 = arith.constant 0 : i32
    return %arg0, %c0_i32, %c0_i32_0 : i32, i32, i32
  }
}

</mosaic_0001>

<bundles_post_ra>
// kernel: tpu_custom_call.1
= control target key start
LH: loop header
LB: loop body
LE: loop exit
PB: predicated region body
PF: predicated region fallthrough
CT: control target
= control target key end

     0   :  { %17 = vsyncpa [#allocation3], 0  ;;  %s3486_s0 = inlined_call_operand.vmem [shape: f32[2,64,32], index: 0, kind: input, shape index: {}]   ;;  %s3487_s1 = inlined_call_operand.vmem [shape: f32[2,48,48], index: 1, kind: input, shape index: {}]   ;;  %s3488_s2 = inlined_call_operand.vmem [shape: f32[2,48,48], index: 2, kind: input, shape index: {}]   ;;  %s3489_s3 = inlined_call_operand.vmem [shape: bf16[32,32], index: 3, kind: input, shape index: {}]   ;;  %s3490_s4 = inlined_call_operand.hbm [shape: f32[1,32], index: 4, kind: input, shape index: {}]   ;;  %s3491_s5 = inlined_call_operand.vmem [shape: bf16[48,32], index: 5, kind: input, shape index: {}]   ;;  %s3492_s6 = inlined_call_operand.hbm [shape: f32[1,32], index: 6, kind: input, shape index: {}]   ;;  %s3493_s7 = inlined_call_operand.vmem [shape: bf16[48,32], index: 7, kind: input, shape index: {}]   ;;  %s3494_s8 = inlined_call_operand.vmem [shape: f32[1,32], index: 8, kind: input, shape index: {}]   ;;  %s3495_s9 = inlined_call_operand.vmem [shape: bf16[32,32], index: 9, kind: input, shape index: {}]   ;;  %s3496_s10 = inlined_call_operand.vmem [shape: f32[1,32], index: 10, kind: input, shape index: {}]   ;;  %s3497_s11 = inlined_call_operand.vmem [shape: bf16[4,1,32], index: 11, kind: input, shape index: {}]   ;;  %s3498_s12 = inlined_call_operand.vmem [shape: f32[2,64,32], index: 12, kind: output, shape index: {}]  }
   0x1   :  { %18 = vsyncpa [#allocation5], 0  ;;  %s2774_s21 = smov 0  }
   0x2 LB: > { %s2780_s22 = sadd.s32 4294967295, %s2703_s21   ;;  %p2091_p0 = scmp.ge.s32.totalorder %s2703_s21, 1  ;;  %s2703_s21 = sphi %s2774_s21, %s24_s21  }
   0x3   : > { %p322_p1 = scmp.lt.s32.totalorder %s2703_s21, 3  ;;  %p3499_p2 = scmp.eq.s32.totalorder %s2780_s22, 0 }
   0x4   : > { %s2705_s24 = smov [#allocation2]   ;;  %s2706_s26 = smov [#allocation4]  }
   0x5   : > { %p2785_p3 = pnand %p2091_p0, %p322_p1  ;;  %s338_s25 = sshll.u32 %s2705_s24, 4  ;;  %s339_s25 = int_to_ptr.vmem [resolvable:$true] %s338_s25 }
   0x6   : > { %s352_s27 = sshll.u32 %s2706_s26, 4  ;;  %s2633_s13 = scalar_lea.hbm %s3490_s4, 16  ;;  %s2797_s27 = int_to_ptr.vmem [resolvable:$true] %s352_s27 }
   0x7   : > { %s3501_s23 = scalar_select %p2785_p3, 1, 0 }
   0x8   : > { %p2472_p4 = pneg %p2785_p3  ;;  %p2634_p6 = scmp.ne.s32.totalorder %s3490_s4, %s2633_s13 }
   0x9   : > { %p2640_p10 = scmp.lt.u32.totalorder %s2633_s13, %s3490_s4 }
   0xa   : > { %p2793_p5 = pnand %p3499_p2, %p2472_p4 }
   0xc   : > { %p2635_p7 = pneg %p2793_p5 }
   0xe   : > { %p2636_p8 = pnand %p2635_p7, %p2634_p6 }
  0x10   : > { %p2637_p9 = pneg %p2636_p8 }
  0x12   : > { %p2642_p11 = pnand %p2640_p10, %p2637_p9 }
  0x14   : > { %2645 = shalt.err (!%p2642_p11)
}
  0x15   : > { %s2646_s18 = scalar_lea.vmem %s339_s25, 16  ;;  %s2653_s19 = scalar_lea.vmem %s339_s25, 32 }
  0x16   : > { %p2647_p12 = scmp.ne.s32.totalorder %s339_s25, %s2646_s18  ;;  %p2654_p1 = scmp.lt.s32.totalorder %s339_s25, %s339_s25 }
  0x17   : > { %p2655_p4 = scmp.lt.s32.totalorder %s2653_s19, %s2646_s18 }
  0x18   : > { %p2649_p13 = pnand %p2647_p12, %p2635_p7 }
  0x19   : > { %p2656_p2 = por %p2655_p4, %p2654_p1 }
  0x1a   : > { %p2650_p0 = pneg %p2649_p13 }
  0x1c   : > { %p2657_p3 = pnand %p2656_p2, %p2650_p0 }
  0x1e   : > { %2660 = shalt.err (!%p2657_p3)
}
  0x1f   : > { %2475 = dma.hbm_to_vmem [thread:$0]  (!%p2793_p5), %s3490_s4, 16, %s339_s25, [#allocation3]  }
  0x20   : > { %s2661_s30 = scalar_lea.hbm %s3492_s6, 16 }
  0x21   : > { %p2662_p6 = scmp.ne.s32.totalorder %s3492_s6, %s2661_s30  ;;  %p2668_p3 = scmp.lt.u32.totalorder %s2661_s30, %s3492_s6 }
  0x23   : > { %p2664_p8 = pnand %p2662_p6, %p2635_p7 }
  0x25   : > { %p2665_p2 = pneg %p2664_p8 }
  0x27   : > { %p2670_p9 = pnand %p2668_p3, %p2665_p2 }
  0x29   : > { %2673 = shalt.err (!%p2670_p9)
}
  0x2a   : > { %s2674_s25 = scalar_lea.vmem %s2797_s27, 16  ;;  %s2681_s17 = scalar_lea.vmem %s2797_s27, 32 }
  0x2b   : > { %p2675_p10 = scmp.ne.s32.totalorder %s2797_s27, %s2674_s25  ;;  %p2682_p13 = scmp.lt.s32.totalorder %s2797_s27, %s2797_s27 }
  0x2c   : > { %p2683_p0 = scmp.lt.s32.totalorder %s2681_s17, %s2674_s25 }
  0x2d   : > { %p2677_p11 = pnand %p2675_p10, %p2635_p7 }
  0x2e   : > { %p2684_p1 = por %p2683_p0, %p2682_p13 }
  0x2f   : > { %p2678_p12 = pneg %p2677_p11 }
  0x31   : > { %p2685_p4 = pnand %p2684_p1, %p2678_p12 }
  0x33   : > { %2688 = shalt.err (!%p2685_p4)
}
  0x34   : > { %2478 = dma.hbm_to_vmem [thread:$0]  (!%p2793_p5), %s3492_s6, 16, %s2797_s27, [#allocation5]  }
  0x35   : > { %p3503_p6 = scmp.ne.s32.totalorder %s3501_s23, 0 }
  0x36   : > { %p3504_p7 = scmp.eq.s32.totalorder (!%p3503_p6), %s2780_s22, 0 }
  0x37   : > { %404 = sbr.rel (%p3503_p6) target bundleno = 1352 (0x548), region = 68 }
  0x3e   : > { %2694 = dma.done.wait (%p3504_p7), [#allocation3], 16   ;;  %p3505_p8 = pmov %p3504_p7 }
  0x3f   : > { %p3506_p2 = pmov %p3504_p7 }
  0x40   : > { %2696 = vsyncadd (%p3505_p8), [#allocation3], 4294967280 }
  0x41   : > { %2698 = dma.done.wait (%p3506_p2), [#allocation5], 16   ;;  %p3507_p3 = pmov %p3506_p2 }
  0x42   : > { %p460_p9 = scmp.lt.s32.totalorder %s2780_s22, 1  ;;  %v2707_v0 = vmov 0.0   ;;  %vm2708_vm0 = vmmov 0   ;;  %v2495_v1 = vld [vmem:[%s3491_s5] sm:$0xff]   ;;  %v2496_v2 = vld [vmem:[%s3491_s5 + $0x8] sm:$0xff]   ;;  %v2497_v3 = vld [vmem:[%s3491_s5 + $0x10] sm:$0xff]   ;;  %v821_v39 = vlaneseq }
  0x43   : > { %2700 = vsyncadd (%p3507_p3), [#allocation5], 4294967280  ;;  %2263 = vmatprep.subr.bf16.mxu1 %v2707_v0  ;;  %2269 = vmatprep.mubr.msk.bf16.mxu1 %vm2708_vm0, %v2707_v0  ;;  %v2498_v6 = vld [vmem:[%s3489_s3] sm:$0xff]   ;;  %v2499_v7 = vld [vmem:[%s3489_s3 + $0x8] sm:$0xff]   ;;  %vm534_vm1 = vcmask 261120   ;;  %vm647_vm2 = vcmask 392192  }
  0x44   : > { %s3509_s22 = smov (!%p460_p9, %s2780_s22), 1  ;;  %2264 = vmatpush3.bf16.msra.mxu1 %v2495_v1  ;;  %2251 = vmatprep.subr.bf16.mxu0 %v2498_v6  ;;  %v2500_v18 = vld [vmem:[%s3493_s7] sm:$0xff]   ;;  %v2501_v23 = vld [vmem:[%s3493_s7 + $0x8] sm:$0xff]   ;;  %v2502_v26 = vld [vmem:[%s3493_s7 + $0x10] sm:$0xff]   ;;  %v822_v40 = vshrl.u32 %v821_v39, 7 }
  0x45   : > { %s2463_s23 = smul.u32 48, %s3509_s22  ;;  %s2169_s20 = sshll.u32 %s3509_s22, 6  ;;  %2265 = vmatprep.subr.bf16.mxu1 %v2707_v0  ;;  %2252 = vmatpush3.bf16.msra.mxu0 %v2498_v6  ;;  %v817_v41 = vld [vmem:[%s3497_s11] sm:$0x1]  ;;  %v2129_v42 = vld [vmem:[%s3497_s11 + $0x1] sm:$0x1] }
  0x46   : > { %s2888_s17 = scalar_lea.vmem %s3486_s0, %s2169_s20  ;;  %2253 = vmatprep.subr.bf16.mxu0 %v2499_v7  ;;  %v819_v43 = vpack.i.b16 %v817_v41, %v817_v41  ;;  %v2954_v44 = vsub.s32 0, %v822_v40  ;;  %v1012_v45 = vpack.i.b16 %v2129_v42, %v2129_v42  ;;  %v2956_v46 = vld [vmem:[#allocation4] ss:$0 sm:$0xff]  ;;  %v2104_v48 = vld [vmem:[#allocation2] ss:$0 sm:$0xff]  ;;  %s479_s19 = scalar_lea.vmem %s3498_s12, %s2169_s20 }
  0x47   : > { %s2877_s13 = scalar_lea.vmem %s3487_s1, %s2463_s23  ;;  %v481_v8 = vld [vmem:[%s2888_s17] sm:$0xff]  ;;  %v482_v9 = vld [vmem:[%s2888_s17 + $0x8] sm:$0xff]  ;;  %v483_v11 = vld [vmem:[%s2888_s17 + $0x10] sm:$0xff]  ;;  %s474_s18 = scalar_lea.vmem %s3488_s2, %s2463_s23 }
  0x48   : > { %v493_v4 = vld [vmem:[%s2877_s13] sm:$0xff]  ;;  %v494_v5 = vld [vmem:[%s2877_s13 + $0x8] sm:$0xff]  ;;  %2266 = vmatpush3.bf16.msra.mxu1 %v2496_v2  ;;  %v489_v10 = vpack.c.bf16 %v482_v9, %v481_v8  ;;  %v484_v12 = vld [vmem:[%s2888_s17 + $0x18] sm:$0xff]  ;;  %v2959_v51 = vrot.slane %v819_v43, %v2954_v44  ;;  %v2964_v56 = vrot.slane %v1012_v45, %v2954_v44 }
  0x49   : > { %2267 = vmatprep.subr.bf16.mxu1 %v2707_v0  ;;  %v499_v13 = vpack.c.bf16 %v494_v5, %v493_v4  ;;  %v485_v14 = vld [vmem:[%s2888_s17 + $0x20] sm:$0xff]  ;;  %v486_v15 = vld [vmem:[%s2888_s17 + $0x28] sm:$0xff]  ;;  %v490_v16 = vpack.c.bf16 %v484_v12, %v483_v11  ;;  %2254 = vmatpush3.bf16.msra.mxu0 %v2499_v7  ;;  %v495_v19 = vld [vmem:[%s2877_s13 + $0x10] sm:$0xff] }
  0x4a   : > { %2255 = vmatprep.mubr.msk.bf16.mxu0 %vm534_vm1, %v489_v10  ;;  %v491_v17 = vpack.c.bf16 %v486_v15, %v485_v14  ;;  %2281 = vmatprep.subr.bf16.mxu0 %v2707_v0  ;;  %v496_v20 = vld [vmem:[%s2877_s13 + $0x18] sm:$0xff]  ;;  %v487_v21 = vld [vmem:[%s2888_s17 + $0x30] sm:$0xff]  ;;  %v497_v27 = vld [vmem:[%s2877_s13 + $0x20] sm:$0xff] }
  0x4b   : > { %v488_v22 = vld [vmem:[%s2888_s17 + $0x38] sm:$0xff]  ;;  %v500_v24 = vpack.c.bf16 %v496_v20, %v495_v19  ;;  %v498_v28 = vld [vmem:[%s2877_s13 + $0x28] sm:$0xff]  ;;  %v502_v29 = vld [vmem:[%s474_s18] sm:$0xff] }
  0x4c   : > { %2268 = vmatpush3.bf16.msra.mxu1 %v2497_v3  ;;  %2256 = vmatmul.mubr.msk.bf16.vlgmr.msra.gmra.mrb[0].mxu0 %vm534_vm1, %v490_v16  ;;  %v492_v25 = vpack.c.bf16 %v488_v22, %v487_v21  ;;  %v503_v30 = vld [vmem:[%s474_s18 + $0x8] sm:$0xff]  ;;  %v501_v31 = vpack.c.bf16 %v498_v28, %v497_v27  ;;  %v504_v33 = vld [vmem:[%s474_s18 + $0x10] sm:$0xff]  ;;  %v505_v34 = vld [vmem:[%s474_s18 + $0x18] sm:$0xff] }
  0x4d   : > { %2259 = vmatprep.mubr.msk.bf16.mxu0 %vm534_vm1, %v491_v17  ;;  %2282 = vmatpush3.bf16.msra.mxu0 %v2500_v18  ;;  %v508_v32 = vpack.c.bf16 %v503_v30, %v502_v29  ;;  %v509_v35 = vpack.c.bf16 %v505_v34, %v504_v33  ;;  %v506_v36 = vld [vmem:[%s474_s18 + $0x20] sm:$0xff]  ;;  %v507_v37 = vld [vmem:[%s474_s18 + $0x28] sm:$0xff] }
  0x4e   : > { %2283 = vmatprep.subr.bf16.mxu0 %v2707_v0  ;;  %v510_v38 = vpack.c.bf16 %v507_v37, %v506_v36  ;;  %v2142_v21 = vld [vmem:[%s3497_s11 + $0x2] sm:$0x1] }
  0x4f   : > { %2270 = vmatmul.mubr.msk.bf16.vlgmr.msra.gmra.mrb[0].mxu1 %vm647_vm2, %v499_v13 }
  0x50   : > { %2273 = vmatprep.mubr.msk.bf16.mxu1 %vm2708_vm0, %v2707_v0 }
  0x51   : > { %2284 = vmatpush3.bf16.msra.mxu0 %v2501_v23 }
  0x52   : > { %2285 = vmatprep.subr.bf16.mxu0 %v2707_v0 }
  0x54   : > { %2260 = vmatmul.mubr.msk.bf16.gmra.mrb[4].mxu0 %vm534_vm1, %v492_v25 }
  0x55   : > { %2286 = vmatpush3.bf16.msra.mxu0 %v2502_v26  ;;  %2287 = vmatprep.mubr.msk.bf16.mxu0 %vm2708_vm0, %v2707_v0 }
  0x57   : > { %2274 = vmatmul.mubr.msk.bf16.gmra.mrb[4].mxu1 %vm647_vm2, %v500_v24 }
  0x58   : > { %2277 = vmatprep.mubr.msk.bf16.mxu1 %vm2708_vm0, %v2707_v0 }
  0x5c   : > { %2288 = vmatmul.mubr.msk.bf16.vlgmr.msra.gmra.mrb[8].mxu0 %vm647_vm2, %v508_v32  ;;  %v3006_v32 = vld [vmem:[%s3494_s8] ss:$0 sm:$0xff] }
  0x5d   : > { %2291 = vmatprep.mubr.msk.bf16.mxu0 %vm2708_vm0, %v2707_v0 }
  0x5f   : > { %2278 = vmatmul.mubr.msk.bf16.gmra.mrb[8].mxu1 %vm647_vm2, %v501_v31  ;;  %v1347_v31 = vpack.i.b16 %v2142_v21, %v2142_v21 }
  0x61   : > { %v3012_v42 = vrot.slane %v1347_v31, %v2954_v44 }
  0x64   : > { %2292 = vmatmul.mubr.msk.bf16.gmra.mrb[12].mxu0 %vm647_vm2, %v509_v35 }
  0x65   : > { %2295 = vmatprep.mubr.msk.bf16.mxu0 %vm2708_vm0, %v2707_v0 }
  0x6c   : > { %2296 = vmatmul.mubr.msk.bf16.gmra.mrb[16].mxu0 %vm647_vm2, %v510_v38 }
 0x11f   : > { %v2257_v52 = vpop.f32.mrb[0].mxu0 }
 0x120   : > { %v590_v57 = vadd.f32 %v2257_v52, %v2104_v48  ;;  %v581_v58 = vpop.f32.mrb[1].mxu0 }
 0x121   : > { %v582_v59 = vadd.f32 %v2104_v48, %v581_v58  ;;  %v2258_v60 = vpop.f32.mrb[2].mxu0 }
 0x122   : > { %v691_v47 = vpop.f32.mrb[0].mxu1  ;;  %v593_v62 = vadd.f32 %v2258_v60, %v2104_v48  ;;  %v584_v63 = vpop.f32.mrb[3].mxu0 }
 0x123   : > { %v2271_v49 = vpop.f32.mrb[1].mxu1  ;;  %v692_v53 = vadd.f32 %v2956_v46, %v691_v47  ;;  %v585_v0 = vadd.f32 %v2104_v48, %v584_v63 }
 0x124   : > { %v694_v50 = vpop.f32.mrb[2].mxu1  ;;  %v2972_v3 = vpack.c.bf16 %v593_v62, %v590_v57 }
 0x125   : > { %v695_v54 = vadd.f32 %v2956_v46, %v694_v50  ;;  %v2272_v55 = vpop.f32.mrb[3].mxu1  ;;  %v2974_v5 = vpack.c.bf16 %v585_v0, %v582_v59 }
 0x127   : > { %v2966_v61 = vpack.c.bf16 %v695_v54, %v692_v53  ;;  %v2261_v10 = vpop.f32.mrb[4].mxu0  ;;  %2305 = vmatprep.mubr.msk.bf16.mxu1 %vm534_vm1, %v2974_v5  ;;  %2319 = vmatprep.mubr.msk.bf16.mxu0 %vm534_vm1, %v2974_v5 }
 0x128   : > { %v606_v14 = vadd.f32 %v2261_v10, %v2104_v48  ;;  %v597_v15 = vpop.f32.mrb[5].mxu0 }
 0x129   : > { %v825_v1 = vmul.bf16 %v2959_v51, %v2966_v61  ;;  %v1018_v2 = vmul.bf16 %v2964_v56, %v2966_v61  ;;  %v598_v16 = vadd.f32 %v2104_v48, %v597_v15  ;;  %v2262_v17 = vpop.f32.mrb[6].mxu0  ;;  %v1353_v52 = vmul.bf16 %v3012_v42, %v2966_v61 }
 0x12a   : > { %v699_v4 = vpop.f32.mrb[4].mxu1  ;;  %v609_v19 = vadd.f32 %v2262_v17, %v2104_v48  ;;  %v600_v20 = vpop.f32.mrb[7].mxu0 }
 0x12b   : > { %v2275_v6 = vpop.f32.mrb[5].mxu1  ;;  %2451 = vmatprep.subr.msk.bf16.mxu1 %vm534_vm1, %v825_v1  ;;  %2454 = vmatprep.subr.msk.bf16.mxu0 %vm534_vm1, %v1018_v2  ;;  %v841_v7 = vsel %vm534_vm1, %v825_v1, 0  ;;  %v1022_v8 = vsel %vm534_vm1, %v1018_v2, 0  ;;  %v700_v11 = vadd.f32 %v2956_v46, %v699_v4  ;;  %v601_v22 = vadd.f32 %v2104_v48, %v600_v20  ;;  %v2151_v2 = vld [vmem:[%s3497_s11 + $0x3] sm:$0x1] }
 0x12c   : > { %v702_v9 = vpop.f32.mrb[6].mxu1  ;;  %2300 = vmatpush3.bf16.xpose.msra.mxu1 %v841_v7  ;;  %2314 = vmatpush3.bf16.xpose.msra.mxu0 %v1022_v8  ;;  %v2995_v25 = vpack.c.bf16 %v609_v19, %v606_v14  ;;  %v1357_v63 = vsel %vm534_vm1, %v1353_v52, 0  ;;  %v1613_v7 = vpack.i.b16 %v2151_v2, %v2151_v2 }
 0x12d   : > { %v703_v12 = vadd.f32 %v2956_v46, %v702_v9  ;;  %v2276_v13 = vpop.f32.mrb[7].mxu1  ;;  %v2997_v27 = vpack.c.bf16 %v601_v22, %v598_v16 }
 0x12e   : > { %v3059_v8 = vrot.slane %v1613_v7, %v2954_v44 }
 0x12f   : > { %v2986_v18 = vpack.c.bf16 %v703_v12, %v700_v11  ;;  %v791_v34 = vpop.f32.mrb[8].mxu0 }
 0x130   : > { %v2289_v38 = vpop.f32.mrb[9].mxu0  ;;  %v792_v39 = vadd.f32 %v3006_v32, %v791_v34  ;;  %v1619_v10 = vmul.bf16 %v3059_v8, %v2966_v61 }
 0x131   : > { %v826_v23 = vmul.bf16 %v2959_v51, %v2986_v18  ;;  %v1019_v24 = vmul.bf16 %v2964_v56, %v2986_v18  ;;  %v794_v40 = vpop.f32.mrb[10].mxu0  ;;  %v1354_v0 = vmul.bf16 %v3012_v42, %v2986_v18  ;;  %v1620_v12 = vmul.bf16 %v3059_v8, %v2986_v18 }
 0x132   : > { %v707_v26 = vpop.f32.mrb[8].mxu1  ;;  %v795_v43 = vadd.f32 %v3006_v32, %v794_v40  ;;  %v2290_v45 = vpop.f32.mrb[11].mxu0  ;;  %v1623_v11 = vsel %vm534_vm1, %v1619_v10, 0 }
 0x133   : > { %v2279_v28 = vpop.f32.mrb[9].mxu1  ;;  %2452 = vmatprep.subr.msk.bf16.mxu1 %vm534_vm1, %v826_v23  ;;  %2455 = vmatprep.subr.msk.bf16.mxu0 %vm534_vm1, %v1019_v24  ;;  %v844_v29 = vsel %vm534_vm1, %v826_v23, 0  ;;  %v1025_v30 = vsel %vm534_vm1, %v1019_v24, 0  ;;  %v708_v35 = vadd.f32 %v2956_v46, %v707_v26  ;;  %v1360_v4 = vsel %vm534_vm1, %v1354_v0, 0 }
 0x134   : > { %v710_v33 = vpop.f32.mrb[10].mxu1  ;;  %2302 = vmatpush3.bf16.xpose.msra.mxu1 %v844_v29  ;;  %2316 = vmatpush3.bf16.xpose.msra.mxu0 %v1025_v30  ;;  %v3017_v49 = vpack.c.bf16 %v795_v43, %v792_v39  ;;  %v1626_v44 = vsel %vm534_vm1, %v1620_v12, 0 }
 0x135   : > { %v711_v36 = vadd.f32 %v2956_v46, %v710_v33  ;;  %v2280_v37 = vpop.f32.mrb[11].mxu1 }
 0x136   : > { %v1187_v54 = vmul.bf16 %v2964_v56, %v3017_v49 }
 0x137   : > { %v716_v41 = vpack.c.bf16 %v711_v36, %v708_v35  ;;  %v799_v53 = vpop.f32.mrb[12].mxu0 }
 0x138   : > { %v800_v55 = vadd.f32 %v3006_v32, %v799_v53  ;;  %v2293_v57 = vpop.f32.mrb[13].mxu0 }
 0x139   : > { %v827_v47 = vmul.bf16 %v2959_v51, %v716_v41  ;;  %v1020_v48 = vmul.bf16 %v2964_v56, %v716_v41  ;;  %v802_v58 = vpop.f32.mrb[14].mxu0  ;;  %v1355_v6 = vmul.bf16 %v3012_v42, %v716_v41  ;;  %v1621_v61 = vmul.bf16 %v3059_v8, %v716_v41 }
 0x13a   : > { %v803_v59 = vadd.f32 %v3006_v32, %v802_v58  ;;  %v2294_v60 = vpop.f32.mrb[15].mxu0 }
 0x13b   : > { %2453 = vmatprep.subr.msk.bf16.mxu1 %vm534_vm1, %v827_v47  ;;  %2456 = vmatprep.subr.msk.bf16.mxu0 %vm534_vm1, %v1020_v48  ;;  %v847_v46 = vsel %vm534_vm1, %v827_v47, 0  ;;  %v1028_v50 = vsel %vm534_vm1, %v1020_v48, 0  ;;  %v1363_v9 = vsel %vm534_vm1, %v1355_v6, 0  ;;  %v1629_v13 = vsel %vm534_vm1, %v1621_v61, 0 }
 0x13c   : > { %2304 = vmatpush3.bf16.xpose.msra.mxu1 %v847_v46  ;;  %2318 = vmatpush3.bf16.xpose.msra.mxu0 %v1028_v50  ;;  %v3030_v62 = vpack.c.bf16 %v803_v59, %v800_v55 }
 0x13d   : > { %2457 = vmatprep.subr.msk.bf16.mxu0 %vm534_vm1, %v1353_v52  ;;  %2327 = vmatprep.subr.bf16.mxu1 %v1187_v54 }
 0x13e   : > { %v1188_v1 = vmul.bf16 %v2964_v56, %v3030_v62 }
 0x13f   : > { %v807_v14 = vpop.f32.mrb[16].mxu0 }
 0x140   : > { %v808_v15 = vadd.f32 %v3006_v32, %v807_v14  ;;  %v2297_v16 = vpop.f32.mrb[17].mxu0 }
 0x141   : > { %v810_v17 = vpop.f32.mrb[18].mxu0 }
 0x142   : > { %v2298_v18 = vpop.f32.mrb[19].mxu0 }
 0x143   : > { %2306 = vmatmul.mubr.msk.bf16.vlgmr.msra.gmra.mrb[12].mxu1 %vm534_vm1, %v2972_v3  ;;  %2320 = vmatmul.mubr.msk.bf16.vlgmr.msra.gmra.mrb[20].mxu0 %vm534_vm1, %v2972_v3 }
 0x144   : > { %2356 = vmatpush3.bf16.xpose.msra.mxu0 %v1357_v63  ;;  %2309 = vmatprep.mubr.msk.bf16.mxu1 %vm534_vm1, %v2997_v27 }
 0x145   : > { %2458 = vmatprep.subr.msk.bf16.mxu0 %vm534_vm1, %v1354_v0  ;;  %2323 = vmatprep.mubr.msk.bf16.mxu0 %vm534_vm1, %v2997_v27 }
 0x146   : > { %2328 = vmatpush3.bf16.msra.mxu1 %v1187_v54 }
 0x147   : > { %2329 = vmatprep.subr.bf16.mxu1 %v1188_v1 }
 0x14a   : > { %2330 = vmatpush3.bf16.msra.mxu1 %v1188_v1 }
 0x14b   : > { %2310 = vmatmul.mubr.msk.bf16.gmra.mrb[16].mxu1 %vm534_vm1, %v2995_v25  ;;  %2324 = vmatmul.mubr.msk.bf16.gmra.mrb[24].mxu0 %vm534_vm1, %v2995_v25 }
 0x14c   : > { %2358 = vmatpush3.bf16.xpose.msra.mxu0 %v1360_v4  ;;  %2361 = vmatprep.mubr.msk.bf16.mxu0 %vm534_vm1, %v2974_v5 }
 0x14d   : > { %2459 = vmatprep.subr.msk.bf16.mxu0 %vm534_vm1, %v1355_v6 }
 0x154   : > { %2360 = vmatpush3.bf16.xpose.msra.mxu0 %v1363_v9 }
 0x155   : > { %2460 = vmatprep.subr.msk.bf16.mxu0 %vm534_vm1, %v1619_v10 }
 0x15b   : > { %2362 = vmatmul.mubr.msk.bf16.vlgmr.msra.gmra.mrb[28].mxu0 %vm534_vm1, %v2972_v3 }
 0x15c   : > { %2365 = vmatprep.mubr.msk.bf16.mxu0 %vm534_vm1, %v2997_v27  ;;  %2384 = vmatpush3.bf16.xpose.msra.mxu0 %v1623_v11 }
 0x15d   : > { %2461 = vmatprep.subr.msk.bf16.mxu0 %vm534_vm1, %v1620_v12 }
 0x163   : > { %2366 = vmatmul.mubr.msk.bf16.gmra.mrb[32].mxu0 %vm534_vm1, %v2995_v25 }
 0x164   : > { %2386 = vmatpush3.bf16.xpose.msra.mxu0 %v1626_v44  ;;  %2389 = vmatprep.mubr.msk.bf16.mxu0 %vm534_vm1, %v2974_v5  ;;  %v811_v5 = vadd.f32 %v3006_v32, %v810_v17 }
 0x165   : > { %2462 = vmatprep.subr.msk.bf16.mxu0 %vm534_vm1, %v1621_v61 }
 0x166   : > { %v3089_v19 = vpack.c.bf16 %v811_v5, %v808_v15 }
 0x168   : > { %v1189_v20 = vmul.bf16 %v2964_v56, %v3089_v19 }
 0x16a   : > { %2331 = vmatprep.subr.bf16.mxu1 %v1189_v20 }
 0x16b   : > { %2332 = vmatpush3.bf16.msra.mxu1 %v1189_v20 }
 0x16c   : > { %2388 = vmatpush3.bf16.xpose.msra.mxu0 %v1629_v13 }
 0x173   : > { %2390 = vmatmul.mubr.msk.bf16.vlgmr.msra.gmra.mrb[36].mxu0 %vm534_vm1, %v2972_v3  ;;  %v3095_v3 = vmul.bf16 %v2959_v51, %v3017_v49 }
 0x174   : > { %2393 = vmatprep.mubr.msk.bf16.mxu0 %vm534_vm1, %v2997_v27 }
 0x175   : > { %2341 = vmatprep.subr.bf16.mxu1 %v3095_v3 }
 0x17b   : > { %2394 = vmatmul.mubr.msk.bf16.gmra.mrb[40].mxu0 %vm534_vm1, %v2995_v25 }
 0x216   : > { %v3098_v21 = vpop.f32.mrb[12].mxu1  ;;  %v3100_v22 = vpop.f32.mrb[20].mxu0 }
 0x217   : > { %v3102_v23 = vpop.f32.mrb[13].mxu1  ;;  %v3104_v24 = vpop.f32.mrb[21].mxu0  ;;  %v1101_v25 = vsel %vm647_vm2, %v3100_v22, -inf  ;;  %v920_v46 = vsel %vm647_vm2, %v3098_v21, -inf }
 0x218   : > { %1102 = vmax.xlane.f32.xlu1 %v1101_v25  ;;  %v3108_v56 = vpop.f32.mrb[14].mxu1  ;;  %v3110_v26 = vpop.f32.mrb[22].mxu0  ;;  %v1095_v27 = vsel %vm647_vm2, %v3104_v24, -inf  ;;  %v914_v47 = vsel %vm647_vm2, %v3102_v23, -inf }
 0x219   : > { %1096 = vmax.xlane.f32.xlu0 %v1095_v27  ;;  %v3114_v28 = vpop.f32.mrb[15].mxu1  ;;  %v3116_v29 = vpop.f32.mrb[23].mxu0  ;;  %v1104_v30 = vsel %vm647_vm2, %v3110_v26, -inf  ;;  %v923_v52 = vsel %vm647_vm2, %v3108_v56, -inf }
 0x21a   : > { %v1098_v31 = vsel %vm647_vm2, %v3116_v29, -inf  ;;  %v917_v48 = vsel %vm647_vm2, %v3114_v28, -inf }
 0x21c   : > { %1105 = vmax.xlane.f32.xlu1 %v1104_v30 }
 0x21d   : > { %1099 = vmax.xlane.f32.xlu0 %v1098_v31 }
 0x21e   : > { %v3122_v32 = vpop.f32.mrb[16].mxu1  ;;  %v3124_v33 = vpop.f32.mrb[24].mxu0 }
 0x21f   : > { %v3126_v34 = vpop.f32.mrb[17].mxu1  ;;  %v3128_v35 = vpop.f32.mrb[25].mxu0  ;;  %v1113_v43 = vsel %vm647_vm2, %v3124_v33, -inf  ;;  %v932_v59 = vsel %vm647_vm2, %v3122_v32, -inf }
 0x220   : > { %v3130_v36 = vpop.f32.mrb[18].mxu1  ;;  %v3132_v37 = vpop.f32.mrb[26].mxu0  ;;  %v1107_v38 = vsel %vm647_vm2, %v3128_v35, -inf  ;;  %v926_v55 = vsel %vm647_vm2, %v3126_v34, -inf }
 0x221   : > { %1108 = vmax.xlane.f32.xlu0 %v1107_v38  ;;  %v3136_v39 = vpop.f32.mrb[19].mxu1  ;;  %v3138_v40 = vpop.f32.mrb[27].mxu0  ;;  %v1116_v45 = vsel %vm647_vm2, %v3132_v37, -inf  ;;  %v935_v63 = vsel %vm647_vm2, %v3130_v36, -inf }
 0x222   : > { %v1110_v41 = vsel %vm647_vm2, %v3138_v40, -inf  ;;  %v929_v58 = vsel %vm647_vm2, %v3136_v39, -inf }
 0x223   : > { %1111 = vmax.xlane.f32.xlu1 %v1110_v41 }
 0x225   : > { %1114 = vmax.xlane.f32.xlu0 %v1113_v43 }
 0x227   : > { %1117 = vmax.xlane.f32.xlu1 %v1116_v45 }
 0x229   : > { %915 = vmax.xlane.f32.xlu0 %v914_v47 }
 0x22b   : > { %918 = vmax.xlane.f32.xlu1 %v917_v48 }
 0x22d   : > { %921 = vmax.xlane.f32.xlu0 %v920_v46 }
 0x22e   : > { %v3152_v50 = vpop.f32.mrb[28].mxu0 }
 0x22f   : > { %v3156_v53 = vpop.f32.mrb[29].mxu0  ;;  %924 = vmax.xlane.f32.xlu1 %v923_v52  ;;  %v1436_v7 = vsel %vm647_vm2, %v3152_v50, -inf }
 0x230   : > { %v3158_v54 = vpop.f32.mrb[30].mxu0  ;;  %v1430_v2 = vsel %vm647_vm2, %v3156_v53, -inf }
 0x231   : > { %v3162_v57 = vpop.f32.mrb[31].mxu0  ;;  %927 = vmax.xlane.f32.xlu0 %v926_v55  ;;  %v1439_v9 = vsel %vm647_vm2, %v3158_v54, -inf }
 0x232   : > { %v1433_v6 = vsel %vm647_vm2, %v3162_v57, -inf }
 0x233   : > { %930 = vmax.xlane.f32.xlu1 %v929_v58 }
 0x235   : > { %933 = vmax.xlane.f32.xlu0 %v932_v59 }
 0x236   : > { %v3168_v60 = vpop.f32.mrb[32].mxu0 }
 0x237   : > { %v3172_v0 = vpop.f32.mrb[33].mxu0  ;;  %936 = vmax.xlane.f32.xlu1 %v935_v63  ;;  %v1448_v12 = vsel %vm647_vm2, %v3168_v60, -inf }
 0x238   : > { %v3174_v1 = vpop.f32.mrb[34].mxu0  ;;  %v1442_v10 = vsel %vm647_vm2, %v3172_v0, -inf }
 0x239   : > { %v3178_v4 = vpop.f32.mrb[35].mxu0  ;;  %1431 = vmax.xlane.f32.xlu0 %v1430_v2  ;;  %v1451_v61 = vsel %vm647_vm2, %v3174_v1, -inf }
 0x23a   : > { %v1445_v11 = vsel %vm647_vm2, %v3178_v4, -inf }
 0x23b   : > { %1434 = vmax.xlane.f32.xlu1 %v1433_v6 }
 0x23d   : > { %1437 = vmax.xlane.f32.xlu0 %v1436_v7 }
 0x23f   : > { %1440 = vmax.xlane.f32.xlu1 %v1439_v9 }
 0x241   : > { %1443 = vmax.xlane.f32.xlu0 %v1442_v10 }
 0x243   : > { %1446 = vmax.xlane.f32.xlu1 %v1445_v11 }
 0x245   : > { %1449 = vmax.xlane.f32.xlu0 %v1448_v12 }
 0x246   : > { %v3192_v44 = vpop.f32.mrb[36].mxu0 }
 0x247   : > { %v3196_v13 = vpop.f32.mrb[37].mxu0  ;;  %1452 = vmax.xlane.f32.xlu1 %v1451_v61  ;;  %v1702_v5 = vsel %vm647_vm2, %v3192_v44, -inf }
 0x248   : > { %v3198_v14 = vpop.f32.mrb[38].mxu0  ;;  %v1696_v15 = vsel %vm647_vm2, %v3196_v13, -inf }
 0x249   : > { %v3202_v16 = vpop.f32.mrb[39].mxu0  ;;  %1697 = vmax.xlane.f32.xlu0 %v1696_v15  ;;  %v1705_v20 = vsel %vm647_vm2, %v3198_v14, -inf }
 0x24a   : > { %v1699_v17 = vsel %vm647_vm2, %v3202_v16, -inf }
 0x24b   : > { %1700 = vmax.xlane.f32.xlu1 %v1699_v17 }
 0x24d   : > { %1703 = vmax.xlane.f32.xlu0 %v1702_v5 }
 0x24e   : > { %v3208_v18 = vpop.f32.mrb[40].mxu0 }
 0x24f   : > { %v3212_v25 = vpop.f32.mrb[41].mxu0  ;;  %1706 = vmax.xlane.f32.xlu1 %v1705_v20  ;;  %v1714_v41 = vsel %vm647_vm2, %v3208_v18, -inf }
 0x250   : > { %v3214_v27 = vpop.f32.mrb[42].mxu0  ;;  %v1708_v30 = vsel %vm647_vm2, %v3212_v25, -inf }
 0x251   : > { %v3218_v31 = vpop.f32.mrb[43].mxu0  ;;  %1709 = vmax.xlane.f32.xlu0 %v1708_v30  ;;  %v1717_v43 = vsel %vm647_vm2, %v3214_v27, -inf }
 0x252   : > { %v1711_v38 = vsel %vm647_vm2, %v3218_v31, -inf }
 0x253   : > { %1712 = vmax.xlane.f32.xlu1 %v1711_v38 }
 0x255   : > { %1715 = vmax.xlane.f32.xlu0 %v1714_v41 }
 0x257   : > { %1718 = vmax.xlane.f32.xlu1 %v1717_v43 }
 0x2a5   : > { %v1103_v45 = vpop.xlane.xlu1 %1102 }
 0x2a6   : > { %v1121_v47 = vsub.f32 %v3100_v22, %v1103_v45  ;;  %v1097_v48 = vpop.xlane.xlu0 %1096 }
 0x2a7   : > { %v1119_v46 = vsub.f32 %v3104_v24, %v1097_v48 }
 0x2a8   : > { %v1131_v52 = vmul.f32 1.442695, %v1121_v47 }
 0x2a9   : > { %v1127_v55 = vmul.f32 1.442695, %v1119_v46  ;;  %v1106_v58 = vpop.xlane.xlu1 %1105 }
 0x2aa   : > { %v1122_v59 = vsub.f32 %v3110_v26, %v1106_v58  ;;  %v1100_v63 = vpop.xlane.xlu0 %1099 }
 0x2ab   : > { %2505 = vpow2.f32 %v1127_v55  ;;  %v1120_v2 = vsub.f32 %v3116_v29, %v1100_v63 }
 0x2ac   : > { %2507 = vpow2.f32 %v1131_v52  ;;  %v1133_v6 = vmul.f32 1.442695, %v1122_v59 }
 0x2ad   : > { %v1129_v7 = vmul.f32 1.442695, %v1120_v2 }
 0x2ae   : > { %v1109_v9 = vpop.xlane.xlu0 %1108 }
 0x2af   : > { %2509 = vpow2.f32 %v1129_v7  ;;  %v1123_v10 = vsub.f32 %v3128_v35, %v1109_v9 }
 0x2b0   : > { %v1112_v22 = vpop.xlane.xlu1 %1111  ;;  %2511 = vpow2.f32 %v1133_v6 }
 0x2b1   : > { %v1135_v11 = vmul.f32 1.442695, %v1123_v10  ;;  %v1124_v24 = vsub.f32 %v3138_v40, %v1112_v22 }
 0x2b2   : > { %v1115_v12 = vpop.xlane.xlu0 %1114 }
 0x2b3   : > { %2513 = vpow2.f32 %v1135_v11  ;;  %v1137_v61 = vmul.f32 1.442695, %v1124_v24  ;;  %v1125_v26 = vsub.f32 %v3124_v33, %v1115_v12 }
 0x2b4   : > { %v1118_v15 = vpop.xlane.xlu1 %1117 }
 0x2b5   : > { %v3233_v17 = vpop.eup %2505  ;;  %2515 = vpow2.f32 %v1137_v61  ;;  %v1139_v29 = vmul.f32 1.442695, %v1125_v26  ;;  %v1126_v5 = vsub.f32 %v3132_v37, %v1118_v15 }
 0x2b6   : > { %v916_v20 = vpop.xlane.xlu0 %915  ;;  %v1143_v35 = vsel %vm647_vm2, %v3233_v17, 0.0  ;;  %v3238_v30 = vpop.eup %2507 }
 0x2b7   : > { %2517 = vpow2.f32 %v1139_v29  ;;  %v1141_v40 = vmul.f32 1.442695, %v1126_v5  ;;  %v938_v38 = vsub.f32 %v3102_v23, %v916_v20  ;;  %1144 = vadd.xlane.f32.xlu0 %v1143_v35  ;;  %v1149_v37 = vsel %vm647_vm2, %v3238_v30, 0.0 }
 0x2b8   : > { %v919_v41 = vpop.xlane.xlu1 %918 }
 0x2b9   : > { %v3241_v33 = vpop.eup %2509  ;;  %2519 = vpow2.f32 %v1141_v40  ;;  %v946_v43 = vmul.f32 1.442695, %v938_v38  ;;  %v939_v45 = vsub.f32 %v3114_v28, %v919_v41 }
 0x2ba   : > { %v922_v47 = vpop.xlane.xlu0 %921  ;;  %v1146_v48 = vsel %vm647_vm2, %v3241_v33, 0.0  ;;  %v3248_v46 = vpop.eup %2511 }
 0x2bb   : > { %2521 = vpow2.f32 %v946_v43  ;;  %v948_v52 = vmul.f32 1.442695, %v939_v45  ;;  %v940_v23 = vsub.f32 %v3098_v21, %v922_v47  ;;  %1150 = vadd.xlane.f32.xlu0 %v1149_v37  ;;  %1147 = vadd.xlane.f32.xlu1 %v1146_v48  ;;  %v1152_v6 = vsel %vm647_vm2, %v3248_v46, 0.0 }
 0x2bc   : > { %v925_v55 = vpop.xlane.xlu1 %924 }
 0x2bd   : > { %v3251_v58 = vpop.eup %2513  ;;  %2523 = vpow2.f32 %v948_v52  ;;  %v950_v28 = vmul.f32 1.442695, %v940_v23  ;;  %v941_v59 = vsub.f32 %v3108_v56, %v925_v55 }
 0x2be   : > { %v928_v63 = vpop.xlane.xlu0 %927  ;;  %v1155_v2 = vsel %vm647_vm2, %v3251_v58, 0.0 }
 0x2bf   : > { %v3258_v7 = vpop.eup %2515  ;;  %2525 = vpow2.f32 %v950_v28  ;;  %v952_v21 = vmul.f32 1.442695, %v941_v59  ;;  %v942_v9 = vsub.f32 %v3126_v34, %v928_v63  ;;  %1156 = vadd.xlane.f32.xlu0 %v1155_v2  ;;  %1153 = vadd.xlane.f32.xlu1 %v1152_v6 }
 0x2c0   : > { %v931_v10 = vpop.xlane.xlu1 %930  ;;  %v1158_v61 = vsel %vm647_vm2, %v3258_v7, 0.0 }
 0x2c1   : > { %v3261_v22 = vpop.eup %2517  ;;  %2527 = vpow2.f32 %v952_v21  ;;  %v954_v56 = vmul.f32 1.442695, %v942_v9  ;;  %v943_v11 = vsub.f32 %v3136_v39, %v931_v10 }
 0x2c2   : > { %v934_v24 = vpop.xlane.xlu0 %933  ;;  %v1161_v12 = vsel %vm647_vm2, %v3261_v22, 0.0 }
 0x2c3   : > { %v3268_v26 = vpop.eup %2519  ;;  %2529 = vpow2.f32 %v954_v56  ;;  %v956_v34 = vmul.f32 1.442695, %v943_v11  ;;  %v944_v15 = vsub.f32 %v3122_v32, %v934_v24  ;;  %1162 = vadd.xlane.f32.xlu0 %v1161_v12  ;;  %1159 = vadd.xlane.f32.xlu1 %v1158_v61 }
 0x2c4   : > { %v937_v29 = vpop.xlane.xlu1 %936  ;;  %v1164_v38 = vsel %vm647_vm2, %v3268_v26, 0.0 }
 0x2c5   : > { %v3271_v5 = vpop.eup %2521  ;;  %2531 = vpow2.f32 %v956_v34  ;;  %v958_v39 = vmul.f32 1.442695, %v944_v15  ;;  %v945_v20 = vsub.f32 %v3130_v36, %v937_v29 }
 0x2c6   : > { %v1432_v35 = vpop.xlane.xlu0 %1431  ;;  %v962_v40 = vsel %vm647_vm2, %v3271_v5, 0.0 }
 0x2c7   : > { %v3278_v41 = vpop.eup %2523  ;;  %2533 = vpow2.f32 %v958_v39  ;;  %v960_v32 = vmul.f32 1.442695, %v945_v20  ;;  %v1454_v43 = vsub.f32 %v3156_v53, %v1432_v35  ;;  %963 = vadd.xlane.f32.xlu0 %v962_v40  ;;  %1165 = vadd.xlane.f32.xlu1 %v1164_v38 }
 0x2c8   : > { %v1435_v45 = vpop.xlane.xlu1 %1434  ;;  %v965_v23 = vsel %vm647_vm2, %v3278_v41, 0.0 }
 0x2c9   : > { %v3281_v47 = vpop.eup %2525  ;;  %2535 = vpow2.f32 %v960_v32  ;;  %v1462_v36 = vmul.f32 1.442695, %v1454_v43  ;;  %v1455_v37 = vsub.f32 %v3162_v57, %v1435_v45 }
 0x2ca   : > { %v1438_v48 = vpop.xlane.xlu0 %1437  ;;  %v968_v52 = vsel %vm647_vm2, %v3281_v47, 0.0 }
 0x2cb   : > { %v3288_v55 = vpop.eup %2527  ;;  %2537 = vpow2.f32 %v1462_v36  ;;  %v1464_v53 = vmul.f32 1.442695, %v1455_v37  ;;  %v1456_v28 = vsub.f32 %v3152_v50, %v1438_v48  ;;  %969 = vadd.xlane.f32.xlu0 %v968_v52  ;;  %966 = vadd.xlane.f32.xlu1 %v965_v23 }
 0x2cc   : > { %v1441_v59 = vpop.xlane.xlu1 %1440  ;;  %v971_v9 = vsel %vm647_vm2, %v3288_v55, 0.0 }
 0x2cd   : > { %v3291_v63 = vpop.eup %2529  ;;  %2539 = vpow2.f32 %v1464_v53  ;;  %v1466_v57 = vmul.f32 1.442695, %v1456_v28  ;;  %v1457_v2 = vsub.f32 %v3158_v54, %v1441_v59 }
 0x2ce   : > { %v1444_v6 = vpop.xlane.xlu0 %1443  ;;  %v974_v21 = vsel %vm647_vm2, %v3291_v63, 0.0 }
 0x2cf   : > { %v3298_v10 = vpop.eup %2531  ;;  %2541 = vpow2.f32 %v1466_v57  ;;  %v1468_v50 = vmul.f32 1.442695, %v1457_v2  ;;  %v1458_v56 = vsub.f32 %v3172_v0, %v1444_v6  ;;  %975 = vadd.xlane.f32.xlu0 %v974_v21  ;;  %972 = vadd.xlane.f32.xlu1 %v971_v9 }
 0x2d0   : > { %v1447_v11 = vpop.xlane.xlu1 %1446  ;;  %v977_v15 = vsel %vm647_vm2, %v3298_v10, 0.0 }
 0x2d1   : > { %v3301_v24 = vpop.eup %2533  ;;  %2543 = vpow2.f32 %v1468_v50  ;;  %v1470_v54 = vmul.f32 1.442695, %v1458_v56  ;;  %v1459_v12 = vsub.f32 %v3178_v4, %v1447_v11 }
 0x2d2   : > { %v1450_v61 = vpop.xlane.xlu0 %1449  ;;  %v980_v34 = vsel %vm647_vm2, %v3301_v24, 0.0 }
 0x2d3   : > { %v3308_v29 = vpop.eup %2535  ;;  %2545 = vpow2.f32 %v1470_v54  ;;  %v1472_v0 = vmul.f32 1.442695, %v1459_v12  ;;  %v1460_v39 = vsub.f32 %v3168_v60, %v1450_v61  ;;  %981 = vadd.xlane.f32.xlu0 %v980_v34  ;;  %978 = vadd.xlane.f32.xlu1 %v977_v15 }
 0x2d4   : > { %v1453_v20 = vpop.xlane.xlu1 %1452  ;;  %v983_v43 = vsel %vm647_vm2, %v3308_v29, 0.0 }
 0x2d5   : > { %v3311_v35 = vpop.eup %2537  ;;  %2547 = vpow2.f32 %v1472_v0  ;;  %v1474_v4 = vmul.f32 1.442695, %v1460_v39  ;;  %v1461_v40 = vsub.f32 %v3174_v1, %v1453_v20 }
 0x2d6   : > { %v1698_v38 = vpop.xlane.xlu0 %1697  ;;  %v1478_v32 = vsel %vm647_vm2, %v3311_v35, 0.0 }
 0x2d7   : > { %v3318_v45 = vpop.eup %2539  ;;  %2549 = vpow2.f32 %v1474_v4  ;;  %v1476_v60 = vmul.f32 1.442695, %v1461_v40  ;;  %v1720_v36 = vsub.f32 %v3196_v13, %v1698_v38  ;;  %1479 = vadd.xlane.f32.xlu0 %v1478_v32  ;;  %984 = vadd.xlane.f32.xlu1 %v983_v43 }
 0x2d8   : > { %v1701_v37 = vpop.xlane.xlu1 %1700  ;;  %v1481_v28 = vsel %vm647_vm2, %v3318_v45, 0.0 }
 0x2d9   : > { %v3321_v48 = vpop.eup %2541  ;;  %2551 = vpow2.f32 %v1476_v60  ;;  %v1728_v1 = vmul.f32 1.442695, %v1720_v36  ;;  %v1721_v52 = vsub.f32 %v3202_v16, %v1701_v37 }
 0x2da   : > { %v1704_v23 = vpop.xlane.xlu0 %1703  ;;  %v1484_v53 = vsel %vm647_vm2, %v3321_v48, 0.0 }
 0x2db   : > { %v3328_v59 = vpop.eup %2543  ;;  %2553 = vpow2.f32 %v1728_v1  ;;  %v1730_v13 = vmul.f32 1.442695, %v1721_v52  ;;  %v1722_v57 = vsub.f32 %v3192_v44, %v1704_v23  ;;  %1485 = vadd.xlane.f32.xlu0 %v1484_v53  ;;  %1482 = vadd.xlane.f32.xlu1 %v1481_v28 }
 0x2dc   : > { %v1707_v2 = vpop.xlane.xlu1 %1706  ;;  %v1487_v56 = vsel %vm647_vm2, %v3328_v59, 0.0 }
 0x2dd   : > { %v3331_v6 = vpop.eup %2545  ;;  %2555 = vpow2.f32 %v1730_v13  ;;  %v1732_v16 = vmul.f32 1.442695, %v1722_v57  ;;  %v1723_v21 = vsub.f32 %v3198_v14, %v1707_v2 }
 0x2de   : > { %v1710_v9 = vpop.xlane.xlu0 %1709  ;;  %v1490_v50 = vsel %vm647_vm2, %v3331_v6, 0.0 }
 0x2df   : > { %v3338_v11 = vpop.eup %2547  ;;  %2557 = vpow2.f32 %v1732_v16  ;;  %v1734_v44 = vmul.f32 1.442695, %v1723_v21  ;;  %v1724_v54 = vsub.f32 %v3212_v25, %v1710_v9  ;;  %1491 = vadd.xlane.f32.xlu0 %v1490_v50  ;;  %1488 = vadd.xlane.f32.xlu1 %v1487_v56  ;;  %v3389_v50 = vld [vmem:[%s3495_s9] sm:$0xff]  }
 0x2e0   : > { %v1713_v12 = vpop.xlane.xlu1 %1712  ;;  %v1493_v39 = vsel %vm647_vm2, %v3338_v11, 0.0  ;;  %2411 = vmatprep.subr.bf16.mxu0 %v3389_v50 }
 0x2e1   : > { %v3341_v61 = vpop.eup %2549  ;;  %2559 = vpow2.f32 %v1734_v44  ;;  %v1736_v14 = vmul.f32 1.442695, %v1724_v54  ;;  %v1725_v34 = vsub.f32 %v3218_v31, %v1713_v12  ;;  %2412 = vmatpush3.bf16.msra.mxu0 %v3389_v50 }
 0x2e2   : > { %v1716_v15 = vpop.xlane.xlu0 %1715  ;;  %v1496_v0 = vsel %vm647_vm2, %v3341_v61, 0.0 }
 0x2e3   : > { %v3348_v20 = vpop.eup %2551  ;;  %2561 = vpow2.f32 %v1736_v14  ;;  %v1738_v25 = vmul.f32 1.442695, %v1725_v34  ;;  %v1726_v4 = vsub.f32 %v3208_v18, %v1716_v15  ;;  %1497 = vadd.xlane.f32.xlu0 %v1496_v0  ;;  %1494 = vadd.xlane.f32.xlu1 %v1493_v39 }
 0x2e4   : > { %v1719_v40 = vpop.xlane.xlu1 %1718  ;;  %v1499_v60 = vsel %vm647_vm2, %v3348_v20, 0.0 }
 0x2e5   : > { %v3351_v38 = vpop.eup %2553  ;;  %2563 = vpow2.f32 %v1738_v25  ;;  %v1740_v31 = vmul.f32 1.442695, %v1726_v4  ;;  %v1727_v32 = vsub.f32 %v3214_v27, %v1719_v40 }
 0x2e6   : > { %v1744_v43 = vsel %vm647_vm2, %v3351_v38, 0.0 }
 0x2e7   : > { %v3358_v36 = vpop.eup %2555  ;;  %2565 = vpow2.f32 %v1740_v31  ;;  %v1742_v37 = vmul.f32 1.442695, %v1727_v32  ;;  %1745 = vadd.xlane.f32.xlu0 %v1744_v43  ;;  %1500 = vadd.xlane.f32.xlu1 %v1499_v60 }
 0x2e8   : > { %v1747_v27 = vsel %vm647_vm2, %v3358_v36, 0.0 }
 0x2e9   : > { %v3360_v18 = vpop.eup %2557  ;;  %2567 = vpow2.f32 %v1742_v37 }
 0x2ea   : > { %v1750_v1 = vsel %vm647_vm2, %v3360_v18, 0.0 }
 0x2eb   : > { %v3366_v52 = vpop.eup %2559  ;;  %1751 = vadd.xlane.f32.xlu0 %v1750_v1  ;;  %1748 = vadd.xlane.f32.xlu1 %v1747_v27 }
 0x2ec   : > { %v1753_v28 = vsel %vm647_vm2, %v3366_v52, 0.0 }
 0x2ed   : > { %v3368_v23 = vpop.eup %2561 }
 0x2ee   : > { %v1756_v53 = vsel %vm647_vm2, %v3368_v23, 0.0 }
 0x2ef   : > { %v3374_v13 = vpop.eup %2563  ;;  %1757 = vadd.xlane.f32.xlu0 %v1756_v53  ;;  %1754 = vadd.xlane.f32.xlu1 %v1753_v28 }
 0x2f0   : > { %v1759_v16 = vsel %vm647_vm2, %v3374_v13, 0.0 }
 0x2f1   : > { %v3376_v57 = vpop.eup %2565 }
 0x2f2   : > { %v1762_v2 = vsel %vm647_vm2, %v3376_v57, 0.0 }
 0x2f3   : > { %v3382_v21 = vpop.eup %2567  ;;  %1763 = vadd.xlane.f32.xlu0 %v1762_v2  ;;  %1760 = vadd.xlane.f32.xlu1 %v1759_v16 }
 0x2f4   : > { %v1765_v9 = vsel %vm647_vm2, %v3382_v21, 0.0 }
 0x2f7   : > { %1766 = vadd.xlane.f32.xlu1 %v1765_v9  ;;  %v1007_v9 = vmul.bf16 %v2959_v51, %v3030_v62 }
 0x344   : > { %v1145_v56 = vpop.xlane.xlu0 %1144 }
 0x345   : > { %2569 = vrcp.f32 %v1145_v56 }
 0x348   : > { %v1151_v44 = vpop.xlane.xlu0 %1150  ;;  %v1148_v54 = vpop.xlane.xlu1 %1147 }
 0x349   : > { %2571 = vrcp.f32 %v1148_v54 }
 0x34a   : > { %2573 = vrcp.f32 %v1151_v44 }
 0x34c   : > { %v1157_v12 = vpop.xlane.xlu0 %1156  ;;  %v1154_v14 = vpop.xlane.xlu1 %1153 }
 0x34d   : > { %2575 = vrcp.f32 %v1154_v14 }
 0x34e   : > { %2577 = vrcp.f32 %v1157_v12 }
 0x34f   : > { %v2570_v0 = vpop.eup %2569 }
 0x350   : > { %v1163_v34 = vpop.xlane.xlu0 %1162  ;;  %v1160_v15 = vpop.xlane.xlu1 %1159  ;;  %v1175_v40 = vmul.f32 %v2570_v0, %v3233_v17 }
 0x351   : > { %2579 = vrcp.f32 %v1160_v15 }
 0x352   : > { %2581 = vrcp.f32 %v1163_v34  ;;  %v1008_v34 = vmul.bf16 %v2959_v51, %v3089_v19 }
 0x353   : > { %v2572_v39 = vpop.eup %2571 }
 0x354   : > { %v964_v25 = vpop.xlane.xlu0 %963  ;;  %v1166_v4 = vpop.xlane.xlu1 %1165  ;;  %v1176_v31 = vmul.f32 %v2572_v39, %v3241_v33 }
 0x355   : > { %v2574_v32 = vpop.eup %2573  ;;  %2583 = vrcp.f32 %v1166_v4  ;;  %v1522_v4 = vmul.bf16 %v3012_v42, %v3017_v49 }
 0x356   : > { %v1183_v43 = vpack.c.bf16 %v1176_v31, %v1175_v40  ;;  %2585 = vrcp.f32 %v964_v25  ;;  %v1177_v27 = vmul.f32 %v2574_v32, %v3238_v30 }
 0x357   : > { %v2576_v60 = vpop.eup %2575 }
 0x358   : > { %v970_v37 = vpop.xlane.xlu0 %969  ;;  %v967_v1 = vpop.xlane.xlu1 %966  ;;  %v1178_v53 = vmul.f32 %v2576_v60, %v3248_v46  ;;  %2333 = vmatprep.mubr.msk.bf16.mxu1 %vm647_vm2, %v1183_v43 }
 0x359   : > { %v2578_v28 = vpop.eup %2577  ;;  %2587 = vrcp.f32 %v967_v1 }
 0x35a   : > { %v1184_v2 = vpack.c.bf16 %v1178_v53, %v1177_v27  ;;  %2589 = vrcp.f32 %v970_v37  ;;  %v1179_v56 = vmul.f32 %v2578_v28, %v3251_v58  ;;  %v1523_v28 = vmul.bf16 %v3012_v42, %v3030_v62 }
 0x35b   : > { %v2580_v16 = vpop.eup %2579 }
 0x35c   : > { %v976_v17 = vpop.xlane.xlu0 %975  ;;  %v973_v33 = vpop.xlane.xlu1 %972  ;;  %2334 = vmatmul.mubr.msk.bf16.vlgmr.msra.gmra.mrb[20].mxu1 %vm647_vm2, %v1184_v2  ;;  %v1180_v30 = vmul.f32 %v2580_v16, %v3258_v7 }
 0x35d   : > { %v2582_v44 = vpop.eup %2581  ;;  %2342 = vmatpush3.bf16.msra.mxu1 %v3095_v3  ;;  %2591 = vrcp.f32 %v973_v33 }
 0x35e   : > { %2343 = vmatprep.subr.bf16.mxu1 %v1007_v9  ;;  %v1185_v46 = vpack.c.bf16 %v1180_v30, %v1179_v56  ;;  %2593 = vrcp.f32 %v976_v17  ;;  %v1181_v15 = vmul.f32 %v2582_v44, %v3261_v22  ;;  %v1524_v56 = vmul.bf16 %v3012_v42, %v3089_v19 }
 0x35f   : > { %v2584_v54 = vpop.eup %2583 }
 0x360   : > { %v982_v12 = vpop.xlane.xlu0 %981  ;;  %v979_v14 = vpop.xlane.xlu1 %978  ;;  %2337 = vmatprep.mubr.msk.bf16.mxu1 %vm647_vm2, %v1185_v46  ;;  %v1182_v58 = vmul.f32 %v2584_v54, %v3268_v26 }
 0x361   : > { %v2586_v7 = vpop.eup %2585  ;;  %2344 = vmatpush3.bf16.msra.mxu1 %v1007_v9  ;;  %2595 = vrcp.f32 %v979_v14  ;;  %v1788_v14 = vmul.bf16 %v3059_v8, %v3017_v49 }
 0x362   : > { %2345 = vmatprep.subr.bf16.mxu1 %v1008_v34  ;;  %v1186_v3 = vpack.c.bf16 %v1182_v58, %v1181_v15  ;;  %2597 = vrcp.f32 %v982_v12  ;;  %v994_v51 = vmul.f32 %v2586_v7, %v3271_v5 }
 0x363   : > { %v2588_v0 = vpop.eup %2587 }
 0x364   : > { %v1480_v39 = vpop.xlane.xlu0 %1479  ;;  %v985_v25 = vpop.xlane.xlu1 %984  ;;  %2338 = vmatmul.mubr.msk.bf16.gmra.mrb[24].mxu1 %vm647_vm2, %v1186_v3  ;;  %v995_v22 = vmul.f32 %v2588_v0, %v3278_v41 }
 0x365   : > { %v2590_v40 = vpop.eup %2589  ;;  %2346 = vmatpush3.bf16.msra.mxu1 %v1008_v34  ;;  %2599 = vrcp.f32 %v985_v25 }
 0x366   : > { %2369 = vmatprep.subr.bf16.mxu1 %v1522_v4  ;;  %v1002_v26 = vpack.c.bf16 %v995_v22, %v994_v51  ;;  %2601 = vrcp.f32 %v1480_v39  ;;  %v996_v60 = vmul.f32 %v2590_v40, %v3281_v47 }
 0x367   : > { %v2592_v31 = vpop.eup %2591 }
 0x368   : > { %v1486_v32 = vpop.xlane.xlu0 %1485  ;;  %v1483_v43 = vpop.xlane.xlu1 %1482  ;;  %v997_v37 = vmul.f32 %v2592_v31, %v3288_v55  ;;  %2347 = vmatprep.mubr.msk.bf16.mxu1 %vm647_vm2, %v1002_v26 }
 0x369   : > { %v2594_v1 = vpop.eup %2593  ;;  %2603 = vrcp.f32 %v1483_v43 }
 0x36a   : > { %v1003_v5 = vpack.c.bf16 %v997_v37, %v996_v60  ;;  %2605 = vrcp.f32 %v1486_v32  ;;  %v998_v2 = vmul.f32 %v2594_v1, %v3291_v63  ;;  %v1790_v32 = vmul.bf16 %v3059_v8, %v3089_v19 }
 0x36b   : > { %v2596_v27 = vpop.eup %2595 }
 0x36c   : > { %v1492_v41 = vpop.xlane.xlu0 %1491  ;;  %v1489_v53 = vpop.xlane.xlu1 %1488  ;;  %2348 = vmatmul.mubr.msk.bf16.vlgmr.msra.gmra.mrb[20].mxu1 %vm647_vm2, %v1003_v5  ;;  %v999_v47 = vmul.f32 %v2596_v27, %v3298_v10 }
 0x36d   : > { %v2598_v16 = vpop.eup %2597  ;;  %2370 = vmatpush3.bf16.msra.mxu1 %v1522_v4  ;;  %2607 = vrcp.f32 %v1489_v53  ;;  %v1789_v4 = vmul.bf16 %v3059_v8, %v3030_v62 }
 0x36e   : > { %2371 = vmatprep.subr.bf16.mxu1 %v1523_v28  ;;  %v1004_v55 = vpack.c.bf16 %v999_v47, %v998_v2  ;;  %2609 = vrcp.f32 %v1492_v41  ;;  %v1000_v30 = vmul.f32 %v2598_v16, %v3301_v24 }
 0x36f   : > { %v2600_v17 = vpop.eup %2599 }
 0x370   : > { %v1498_v33 = vpop.xlane.xlu0 %1497  ;;  %v1495_v9 = vpop.xlane.xlu1 %1494  ;;  %2351 = vmatprep.mubr.msk.bf16.mxu1 %vm647_vm2, %v1004_v55  ;;  %v1001_v63 = vmul.f32 %v2600_v17, %v3308_v29  ;;  %v2504_v17 = vld [vmem:[%s3495_s9 + $0x8] sm:$0xff]  }
 0x371   : > { %v2602_v44 = vpop.eup %2601  ;;  %2372 = vmatpush3.bf16.msra.mxu1 %v1523_v28  ;;  %2611 = vrcp.f32 %v1495_v9  ;;  %2413 = vmatprep.subr.bf16.mxu0 %v2504_v17 }
 0x372   : > { %2373 = vmatprep.subr.bf16.mxu1 %v1524_v56  ;;  %v1005_v10 = vpack.c.bf16 %v1001_v63, %v1000_v30  ;;  %2613 = vrcp.f32 %v1498_v33  ;;  %v1510_v42 = vmul.f32 %v2602_v44, %v3311_v35  ;;  %2414 = vmatpush3.bf16.msra.mxu0 %v2504_v17 }
 0x373   : > { %v2604_v46 = vpop.eup %2603 }
 0x374   : > { %v1746_v54 = vpop.xlane.xlu0 %1745  ;;  %v1501_v12 = vpop.xlane.xlu1 %1500  ;;  %2352 = vmatmul.mubr.msk.bf16.gmra.mrb[24].mxu1 %vm647_vm2, %v1005_v10  ;;  %v1511_v24 = vmul.f32 %v2604_v46, %v3318_v45  ;;  %v2160_v46 = vld [vmem:[%s3496_s10] ss:$0 sm:$0xff] }
 0x375   : > { %v2606_v34 = vpop.eup %2605  ;;  %2374 = vmatpush3.bf16.msra.mxu1 %v1524_v56  ;;  %2615 = vrcp.f32 %v1501_v12 }
 0x376   : > { %2397 = vmatprep.subr.bf16.mxu1 %v1788_v14  ;;  %v1518_v29 = vpack.c.bf16 %v1511_v24, %v1510_v42  ;;  %2617 = vrcp.f32 %v1746_v54  ;;  %v1512_v3 = vmul.f32 %v2606_v34, %v3321_v48 }
 0x377   : > { %v2608_v15 = vpop.eup %2607 }
 0x378   : > { %v1752_v58 = vpop.xlane.xlu0 %1751  ;;  %v1749_v7 = vpop.xlane.xlu1 %1748  ;;  %v1513_v0 = vmul.f32 %v2608_v15, %v3328_v59  ;;  %2375 = vmatprep.mubr.msk.bf16.mxu1 %vm647_vm2, %v1518_v29 }
 0x379   : > { %v2610_v49 = vpop.eup %2609  ;;  %2619 = vrcp.f32 %v1749_v7 }
 0x37a   : > { %v1519_v35 = vpack.c.bf16 %v1513_v0, %v1512_v3  ;;  %2621 = vrcp.f32 %v1752_v58  ;;  %v1514_v51 = vmul.f32 %v2610_v49, %v3331_v6 }
 0x37b   : > { %v2612_v39 = vpop.eup %2611 }
 0x37c   : > { %v1758_v45 = vpop.xlane.xlu0 %1757  ;;  %v1755_v25 = vpop.xlane.xlu1 %1754  ;;  %2376 = vmatmul.mubr.msk.bf16.vlgmr.msra.gmra.mrb[20].mxu1 %vm647_vm2, %v1519_v35  ;;  %v1515_v48 = vmul.f32 %v2612_v39, %v3338_v11 }
 0x37d   : > { %v2614_v22 = vpop.eup %2613  ;;  %2398 = vmatpush3.bf16.msra.mxu1 %v1788_v14  ;;  %2623 = vrcp.f32 %v1755_v25 }
 0x37e   : > { %2399 = vmatprep.subr.bf16.mxu1 %v1789_v4  ;;  %v1520_v59 = vpack.c.bf16 %v1515_v48, %v1514_v51  ;;  %2625 = vrcp.f32 %v1758_v45  ;;  %v1516_v62 = vmul.f32 %v2614_v22, %v3341_v61 }
 0x37f   : > { %v2616_v40 = vpop.eup %2615 }
 0x380   : > { %v1764_v26 = vpop.xlane.xlu0 %1763  ;;  %v1761_v31 = vpop.xlane.xlu1 %1760  ;;  %2379 = vmatprep.mubr.msk.bf16.mxu1 %vm647_vm2, %v1520_v59  ;;  %v1517_v6 = vmul.f32 %v2616_v40, %v3348_v20 }
 0x381   : > { %v2618_v43 = vpop.eup %2617  ;;  %2400 = vmatpush3.bf16.msra.mxu1 %v1789_v4  ;;  %2627 = vrcp.f32 %v1761_v31 }
 0x382   : > { %2629 = vrcp.f32 %v1764_v26  ;;  %2401 = vmatprep.subr.bf16.mxu1 %v1790_v32  ;;  %v1521_v11 = vpack.c.bf16 %v1517_v6, %v1516_v62  ;;  %v1776_v1 = vmul.f32 %v2618_v43, %v3351_v38 }
 0x383   : > { %v2620_v60 = vpop.eup %2619 }
 0x384   : > { %v1767_v37 = vpop.xlane.xlu1 %1766  ;;  %2380 = vmatmul.mubr.msk.bf16.gmra.mrb[24].mxu1 %vm647_vm2, %v1521_v11  ;;  %v1777_v5 = vmul.f32 %v2620_v60, %v3358_v36  ;;  %v2622_v8 = vpop.eup %2621 }
 0x385   : > { %2631 = vrcp.f32 %v1767_v37  ;;  %2402 = vmatpush3.bf16.msra.mxu1 %v1790_v32  ;;  %v1778_v20 = vmul.f32 %v2622_v8, %v3360_v18 }
 0x386   : > { %v1784_v19 = vpack.c.bf16 %v1777_v5, %v1776_v1  ;;  %2423 = vmatprep.subr.bf16.mxu1 %v3389_v50 }
 0x387   : > { %v2624_v61 = vpop.eup %2623 }
 0x388   : > { %v1779_v27 = vmul.f32 %v2624_v61, %v3366_v52  ;;  %2403 = vmatprep.mubr.msk.bf16.mxu1 %vm647_vm2, %v1784_v19  ;;  %v2626_v41 = vpop.eup %2625 }
 0x389   : > { %v1780_v38 = vmul.f32 %v2626_v41, %v3368_v23 }
 0x38a   : > { %v1785_v53 = vpack.c.bf16 %v1779_v27, %v1778_v20 }
 0x38b   : > { %v2628_v28 = vpop.eup %2627 }
 0x38c   : > { %v2630_v2 = vpop.eup %2629  ;;  %2404 = vmatmul.mubr.msk.bf16.vlgmr.msra.gmra.mrb[20].mxu1 %vm647_vm2, %v1785_v53  ;;  %v1781_v36 = vmul.f32 %v2628_v28, %v3374_v13 }
 0x38d   : > { %2425 = vmatpush3.bf16.msra.mxu1 %v3389_v50  ;;  %v1782_v18 = vmul.f32 %v2630_v2, %v3376_v57 }
 0x38e   : > { %v1786_v16 = vpack.c.bf16 %v1781_v36, %v1780_v38  ;;  %2424 = vmatprep.subr.bf16.mxu1 %v2504_v17 }
 0x38f   : > { %v2632_v47 = vpop.eup %2631 }
 0x390   : > { %v1783_v52 = vmul.f32 %v2632_v47, %v3382_v21  ;;  %2407 = vmatprep.mubr.msk.bf16.mxu1 %vm647_vm2, %v1786_v16 }
 0x391   : > { %2426 = vmatpush3.bf16.msra.mxu1 %v2504_v17 }
 0x392   : > { %v1787_v55 = vpack.c.bf16 %v1783_v52, %v1782_v18 }
 0x394   : > { %2408 = vmatmul.mubr.msk.bf16.gmra.mrb[24].mxu1 %vm647_vm2, %v1787_v55 }
 0x45f   : > { %v2405_v23 = vpop.f32.mrb[20].mxu1 }
 0x460   : > { %v1837_v13 = vpop.f32.mrb[21].mxu1 }
 0x461   : > { %v2406_v50 = vpop.f32.mrb[22].mxu1 }
 0x462   : > { %v1877_v57 = vpack.c.bf16 %v2406_v50, %v2405_v23  ;;  %v1840_v33 = vpop.f32.mrb[23].mxu1 }
 0x463   : > { %v1876_v21 = vpack.c.bf16 %v1840_v33, %v1837_v13 }
 0x465   : > { %2415 = vmatprep.mubr.msk.bf16.mxu0 %vm534_vm1, %v1876_v21 }
 0x466   : > { %2416 = vmatmul.mubr.msk.bf16.vlgmr.msra.gmra.mrb[44].mxu0 %vm534_vm1, %v1877_v57 }
 0x467   : > { %v2409_v9 = vpop.f32.mrb[24].mxu1 }
 0x468   : > { %v1853_v56 = vpop.f32.mrb[25].mxu1 }
 0x469   : > { %v2410_v30 = vpop.f32.mrb[26].mxu1 }
 0x46a   : > { %v1879_v63 = vpack.c.bf16 %v2410_v30, %v2409_v9  ;;  %v1856_v44 = vpop.f32.mrb[27].mxu1 }
 0x46b   : > { %v1878_v10 = vpack.c.bf16 %v1856_v44, %v1853_v56 }
 0x46d   : > { %2419 = vmatprep.mubr.msk.bf16.mxu1 %vm534_vm1, %v1878_v10 }
 0x46e   : > { %2420 = vmatmul.mubr.msk.bf16.vlgmr.msra.gmra.mrb[28].mxu1 %vm534_vm1, %v1879_v63 }
 0x539   : > { %v2417_v54 = vpop.f32.mrb[44].mxu0 }
 0x53a   : > { %v1958_v12 = vadd.f32 %v2417_v54, %v2160_v46  ;;  %v1949_v14 = vpop.f32.mrb[45].mxu0 }
 0x53b   : > { %v1950_v42 = vadd.f32 %v2160_v46, %v1949_v14  ;;  %v2418_v24 = vpop.f32.mrb[46].mxu0 }
 0x53c   : > { %1982 = vst.msk [vmem:[%s479_s19 + $0x10] sm:$0xff] %vm534_vm1, %v1958_v12  ;;  %v1961_v34 = vadd.f32 %v2418_v24, %v2160_v46  ;;  %v1952_v29 = vpop.f32.mrb[47].mxu0 }
 0x53d   : > { %1980 = vst.msk [vmem:[%s479_s19] sm:$0xff] %vm534_vm1, %v1950_v42  ;;  %v1953_v15 = vadd.f32 %v2160_v46, %v1952_v29 }
 0x53e   : > { %1983 = vst.msk [vmem:[%s479_s19 + $0x18] sm:$0xff] %vm534_vm1, %v1961_v34 }
 0x53f   : > { %1981 = vst.msk [vmem:[%s479_s19 + $0x8] sm:$0xff] %vm534_vm1, %v1953_v15 }
 0x541   : > { %v2421_v58 = vpop.f32.mrb[28].mxu1 }
 0x542   : > { %v1974_v7 = vadd.f32 %v2421_v58, %v2160_v46  ;;  %v1965_v3 = vpop.f32.mrb[29].mxu1 }
 0x543   : > { %v1966_v0 = vadd.f32 %v2160_v46, %v1965_v3  ;;  %v2422_v49 = vpop.f32.mrb[30].mxu1 }
 0x544   : > { %1986 = vst.msk [vmem:[%s479_s19 + $0x30] sm:$0xff] %vm534_vm1, %v1974_v7  ;;  %v1977_v35 = vadd.f32 %v2422_v49, %v2160_v46  ;;  %v1968_v39 = vpop.f32.mrb[31].mxu1 }
 0x545   : > { %1984 = vst.msk [vmem:[%s479_s19 + $0x20] sm:$0xff] %vm534_vm1, %v1966_v0  ;;  %v1969_v45 = vadd.f32 %v2160_v46, %v1968_v39 }
 0x546   : > { %1987 = vst.msk [vmem:[%s479_s19 + $0x38] sm:$0xff] %vm534_vm1, %v1977_v35 }
 0x547   : > { %1985 = vst.msk [vmem:[%s479_s19 + $0x28] sm:$0xff] %vm534_vm1, %v1969_v45 }
 0x548 PF: > { %s24_s21 = sadd.s32 1, %s2703_s21  }
 0x549   : > { %p21_p5 = scmp.ge.s32.totalorder %s24_s21, 4  }
 0x54b   :  { %23 = sbr.rel (!%p21_p5) target bundleno = 2 (0x2), region = 116 }
 0x552   :  { %2009 = vsyncpa [#allocation3], 1 }
 0x553   :  { %2011 = vsyncpa [#allocation3 + $0x1], 1 }
 0x554   :  { %2012 = vsyncpa [#allocation5], 1 }

</bundles_post_ra>
